<compile_context>
chip_gen: v6e
topology: v6e:2x2x1
jax: 0.10.0
libtpu: 0.0.40
codegen_flags: <defaults>
</compile_context>

<pallas_src>
import jax
import jax.numpy as jnp
import numpy as np
from jax.experimental import pallas as pl
from jax.experimental.pallas import tpu as pltpu


def _vmem_limit_bytes():
    """Chip-derived scoped-VMEM limit with headroom (perf feedback item 12)."""
    cap = 128 * 1024 * 1024
    try:
        info = pltpu.get_tpu_info()
        cap = int(getattr(info, "vmem_capacity_bytes", cap))
    except Exception:
        pass
    # 5/8 of physical, capped at 64 MiB: 64 MiB on 128 MiB parts, 40 MiB on v7x.
    return int(min(64 * 1024 * 1024, cap * 5 // 8))


# --------------------------------------------------------------------------- #
# Kernel 1: attention + LSTMCell recurrence, grid = (batch_blocks,), T inside.
# --------------------------------------------------------------------------- #
def caption_rnn_kernel(features_ref, emb_ref,
                       w_init_h_ref, b_init_h_ref, w_init_c_ref, b_init_c_ref,
                       w_enc_att_ref, b_enc_att_ref, w_dec_att_ref, b_dec_att_ref,
                       w_full_ref, b_full_ref,
                       w_ih_emb_ref, w_ih_ctx_ref, b_ih_ref, w_hh_ref, b_hh_ref,
                       h_out_ref):
    feats = features_ref[...]                       # (Bb, R, E) bf16, loop-invariant
    Bb, R, E = feats.shape
    T = emb_ref.shape[0]
    D = w_init_h_ref.shape[1]

    # ---- once per batch block: h0/c0 from mean-pooled features + loop-invariant
    #      encoder projection of the Bahdanau attention (kept bf16 to halve VMEM) --
    mean_bf = jnp.mean(feats.astype(jnp.float32), axis=1).astype(jnp.bfloat16)
    h0 = (jnp.dot(mean_bf, w_init_h_ref[...],
                  preferred_element_type=jnp.float32) + b_init_h_ref[...])
    c0 = (jnp.dot(mean_bf, w_init_c_ref[...],
                  preferred_element_type=jnp.float32) + b_init_c_ref[...])
    enc_proj = (jnp.dot(feats.reshape(Bb * R, E), w_enc_att_ref[...],
                        preferred_element_type=jnp.float32).reshape(Bb, R, -1)
                + b_enc_att_ref[...][None, :, :]).astype(jnp.bfloat16)   # (Bb,R,A)

    w_dec_att = w_dec_att_ref[...]
    b_dec_att = b_dec_att_ref[...]
    w_full = w_full_ref[...]                        # (1, A) f32
    b_full = b_full_ref[...]                        # (1, 1) f32
    w_ih_emb = w_ih_emb_ref[...]
    w_ih_ctx = w_ih_ctx_ref[...]
    w_hh = w_hh_ref[...]
    b_gates = b_ih_ref[...] + b_hh_ref[...]

    def step(t, carry):
        h, c = carry                                # (Bb, D) f32

        # ---- Bahdanau attention: alpha = softmax(v^T tanh(W_e f + W_d h)) ----
        dec_proj = (jnp.dot(h.astype(jnp.bfloat16), w_dec_att,
                            preferred_element_type=jnp.float32) + b_dec_att)
        # tanh/score math stays f32 (v5e has no bf16 VPU/EUP); enc_proj upcast here.
        e = jnp.tanh(enc_proj.astype(jnp.float32) + dec_proj[:, None, :])
        scores = jnp.sum(e * w_full[None, :, :], axis=-1) + b_full      # (Bb, R)
        m = jnp.max(scores, axis=-1, keepdims=True)
        p = jnp.exp(scores - m)
        alpha = p * pl.reciprocal(jnp.sum(p, axis=-1, keepdims=True), approx=True)
        # Context on the MXU (batched (1,R)x(R,E)) instead of VALU bcast + XLU reduce.
        context = jnp.einsum('bqr,bre->bqe',
                             alpha.astype(jnp.bfloat16)[:, None, :], feats,
                             preferred_element_type=jnp.float32)[:, 0, :]  # (Bb, E)

        # ---- LSTMCell on [embedding_t, context]; concat avoided by split W_ih ----
        emb_t = emb_ref[t]                          # (Bb, M) bf16
        gates = (jnp.dot(emb_t, w_ih_emb, preferred_element_type=jnp.float32)
                 + jnp.dot(context.astype(jnp.bfloat16), w_ih_ctx,
                           preferred_element_type=jnp.float32)
                 + jnp.dot(h.astype(jnp.bfloat16), w_hh,
                           preferred_element_type=jnp.float32)
                 + b_gates)                         # (Bb, 4D), gate order i,f,g,o
        i_g = jax.nn.sigmoid(gates[:, 0 * D:1 * D])
        f_g = jax.nn.sigmoid(gates[:, 1 * D:2 * D])
        g_g = jnp.tanh(gates[:, 2 * D:3 * D])
        o_g = jax.nn.sigmoid(gates[:, 3 * D:4 * D])
        c_new = f_g * c + i_g * g_g
        h_new = o_g * jnp.tanh(c_new)

        # NOTE: the reference forward computes sigmoid(f_beta(h)) * context, but the
        # gated context is never read afterwards (dead code in forward) -> omitted.

        h_out_ref[t] = h_new.astype(h_out_ref.dtype)    # one row of the (T,Bb,D) slab
        return h_new, c_new

    jax.lax.fori_loop(0, T, step, (h0, c0))


# --------------------------------------------------------------------------- #
# Kernel 2: output projection, transpose-free: (B, tt, D) x (D, tv) -> (B, tt, tv)
# --------------------------------------------------------------------------- #
def fc_kernel(h_ref, w_ref, b_ref, out_ref):
    bb, tt, d = h_ref.shape
    acc = jnp.dot(h_ref[...].reshape(bb * tt, d), w_ref[...],
                  preferred_element_type=jnp.float32)                   # (bb*tt, tv)
    acc = acc + b_ref[...]                                              # + (1, tv)
    out_ref[...] = acc.reshape(bb, tt, -1).astype(out_ref.dtype)


def _pick_tile(dim, pref, base):
    """Largest multiple of `base` <= pref that divides `dim`, else the full dim."""
    best = None
    c = base
    while c <= min(pref, dim):
        if dim % c == 0:
            best = c
        c += base
    return best if best is not None else dim


def _fc_tiles(T, B, D, V, out_bytes, budget):
    """Largest lane-dense (tt, tv) fc tiles whose double-buffered footprint fits."""
    def usage(tt, tv):
        return 2 * (B * tt * D * 2 + D * tv * 2 + tv * 4 + B * tt * tv * out_bytes)
    for tv_pref in (2048, 1024, 512, 256, 128):
        tv = _pick_tile(V, tv_pref, 128)
        for tt_pref in (T, 64, 32, 16, 8):
            tt = _pick_tile(T, tt_pref, 8)
            if usage(tt, tv) <= budget:
                return tt, tv
    return _pick_tile(T, 8, 8), _pick_tile(V, 128, 128)


def _fc_project(h_btd, w_fc_bf, b_fc, out_dtype, vmem_limit):
    B, T, D = h_btd.shape
    V = w_fc_bf.shape[1]
    out_bytes = jnp.dtype(out_dtype).itemsize
    tt, tv = _fc_tiles(T, B, D, V, out_bytes, budget=int(vmem_limit * 3 // 4))
    return pl.pallas_call(
        fc_kernel,
        out_shape=jax.ShapeDtypeStruct((B, T, V), out_dtype),
        grid_spec=pltpu.PrefetchScalarGridSpec(
            num_scalar_prefetch=0,
            grid=(T // tt, V // tv),
            in_specs=[pl.BlockSpec((B, tt, D), lambda t, v: (0, t, 0)),
                      pl.BlockSpec((D, tv), lambda t, v: (0, v)),
                      pl.BlockSpec((1, tv), lambda t, v: (0, v))],
            out_specs=pl.BlockSpec((B, tt, tv), lambda t, v: (0, t, v)),
        ),
        compiler_params=pltpu.CompilerParams(
            dimension_semantics=("parallel", "parallel"),
            vmem_limit_bytes=vmem_limit),
    )(h_btd, w_fc_bf, b_fc)


# --------------------------------------------------------------------------- #
# Wrapper
# --------------------------------------------------------------------------- #
def caption_generator_forward(features, captions, params, *, batch_block=None,
                              logits_dtype=jnp.float32):
    """features: (B, R, encoder_dim) f32, captions: (B, T) int32 -> (B, T, vocab).

    batch_block: keep the default (full batch) on single-TensorCore v5e/v6e; on
      v7x pass B//2 to shard the parallel batch axis across the two TensorCores.
    logits_dtype: jnp.bfloat16 halves the HBM-write-bound fc output traffic
      (recommended on v5e/v6e if downstream loss/argmax tolerates bf16).
    """
    B, R, E = features.shape
    T = captions.shape[1]
    V, M = params['embedding'].shape
    D = params['w_init_h'].shape[1]

    if batch_block is None:
        batch_block = B            # no split by default (single-TC chips)
    assert B % batch_block == 0
    nb = B // batch_block

    bf = jnp.bfloat16
    feats_bf = features.astype(bf)                                   # (B, R, E) bf16
    emb_tbm = params['embedding'].astype(bf)[captions.T]             # (T, B, M) bf16

    # bf16 only for MXU operands; biases and the elementwise attention vector stay f32.
    weight_args = (
        params['w_init_h'].astype(bf), params['b_init_h'],
        params['w_init_c'].astype(bf), params['b_init_c'],
        params['w_enc_att'].astype(bf), params['b_enc_att'],
        params['w_dec_att'].astype(bf), params['b_dec_att'],
        params['w_full'], params['b_full'],
        params['w_ih_emb'].astype(bf), params['w_ih_ctx'].astype(bf), params['b_ih'],
        params['w_hh'].astype(bf), params['b_hh'],
    )

    def const_spec(arr):
        nd = arr.ndim
        return pl.BlockSpec(arr.shape, lambda b, _nd=nd: (0,) * _nd)

    in_specs = ([pl.BlockSpec((batch_block, R, E), lambda b: (b, 0, 0)),
                 pl.BlockSpec((T, batch_block, M), lambda b: (0, b, 0))]
                + [const_spec(w) for w in weight_args])

    vmem_limit = _vmem_limit_bytes()

    # Kernel 1: whole caption recurrence per batch block; h streamed out time-major
    # as one (T, Bb, D) slab (single DMA) instead of T small per-step writebacks.
    h_all = pl.pallas_call(
        caption_rnn_kernel,
        out_shape=jax.ShapeDtypeStruct((T, B, D), bf),
        grid_spec=pltpu.PrefetchScalarGridSpec(
            num_scalar_prefetch=0,
            grid=(nb,),
            in_specs=in_specs,
            out_specs=pl.BlockSpec((T, batch_block, D), lambda b: (0, b, 0)),
        ),
        compiler_params=pltpu.CompilerParams(
            dimension_semantics=("parallel",),
            vmem_limit_bytes=vmem_limit),
    )(feats_bf, emb_tbm, *weight_args)

    # h is tiny (bf16, T*B*D) next to the (B,T,V) f32 logits, so one XLA transpose
    # here is negligible and makes the fc kernel fully transpose-free.
    h_btd = jnp.transpose(h_all, (1, 0, 2))                           # (B, T, D)

    return _fc_project(h_btd, params['w_fc'].astype(bf), params['b_fc'],
                       logits_dtype, vmem_limit)


# --------------------------------------------------------------------------- #
# Params + pure-JAX f32 reference (mirrors the PyTorch forward, eval-mode dropout)
# --------------------------------------------------------------------------- #
def make_params(key, embed_dim, encoder_dim, decoder_dim, vocab_size, attention_dim):
    keys = jax.random.split(key, 20)

    def init(k, shape, scale=0.1):
        return jax.random.normal(k, shape, dtype=jnp.float32) * scale

    return dict(
        embedding=init(keys[0], (vocab_size, embed_dim)),
        w_init_h=init(keys[1], (encoder_dim, decoder_dim)),
        b_init_h=init(keys[2], (1, decoder_dim)),
        w_init_c=init(keys[3], (encoder_dim, decoder_dim)),
        b_init_c=init(keys[4], (1, decoder_dim)),
        w_enc_att=init(keys[5], (encoder_dim, attention_dim)),
        b_enc_att=init(keys[6], (1, attention_dim)),
        w_dec_att=init(keys[7], (decoder_dim, attention_dim)),
        b_dec_att=init(keys[8], (1, attention_dim)),
        w_full=init(keys[9], (1, attention_dim)),          # Linear(attention_dim, 1)
        b_full=init(keys[10], (1, 1)),
        w_ih_emb=init(keys[11], (embed_dim, 4 * decoder_dim)),
        w_ih_ctx=init(keys[12], (encoder_dim, 4 * decoder_dim)),
        b_ih=init(keys[13], (1, 4 * decoder_dim)),
        w_hh=init(keys[14], (decoder_dim, 4 * decoder_dim)),
        b_hh=init(keys[15], (1, 4 * decoder_dim)),
        w_fbeta=init(keys[16], (decoder_dim, encoder_dim)),   # dead-code gate weights
        b_fbeta=init(keys[17], (1, encoder_dim)),
        w_fc=init(keys[18], (decoder_dim, vocab_size)),
        b_fc=init(keys[19], (1, vocab_size)),
    )


def reference_forward(features, captions, params):
    B, R, E = features.shape
    T = captions.shape[1]
    D = params['w_init_h'].shape[1]
    mean_enc = features.mean(axis=1)
    h = mean_enc @ params['w_init_h'] + params['b_init_h']
    c = mean_enc @ params['w_init_c'] + params['b_init_c']
    emb = params['embedding'][captions]                       # (B, T, M)
    enc_proj = (jnp.einsum('bre,ea->bra', features, params['w_enc_att'])
                + params['b_enc_att'][None])
    outs = []
    for t in range(T):
        dec_proj = h @ params['w_dec_att'] + params['b_dec_att']
        e = jnp.tanh(enc_proj + dec_proj[:, None, :])
        scores = jnp.sum(e * params['w_full'][None], axis=-1) + params['b_full']
        alpha = jax.nn.softmax(scores, axis=-1)
        context = jnp.sum(alpha[:, :, None] * features, axis=1)
        gates = (emb[:, t] @ params['w_ih_emb'] + context @ params['w_ih_ctx']
                 + params['b_ih'] + h @ params['w_hh'] + params['b_hh'])
        i_g, f_g = gates[:, :D], gates[:, D:2 * D]
        g_g, o_g = gates[:, 2 * D:3 * D], gates[:, 3 * D:]
        c = jax.nn.sigmoid(f_g) * c + jax.nn.sigmoid(i_g) * jnp.tanh(g_g)
        h = jax.nn.sigmoid(o_g) * jnp.tanh(c)
        # sigmoid(f_beta(h)) * context is computed then discarded in the PyTorch code.
        outs.append(h @ params['w_fc'] + params['b_fc'])
    return jnp.stack(outs, axis=1)


if __name__ == "__main__":
    # Small, deterministic, tile-friendly shapes (V lane-dense, 4*D = 128, B = 8).
    B, R, T = 8, 16, 8
    embed_dim, encoder_dim, decoder_dim = 32, 64, 32
    vocab_size, attention_dim = 128, 32

    key = jax.random.PRNGKey(0)
    kp, kf, kc = jax.random.split(key, 3)
    params = make_params(kp, embed_dim, encoder_dim, decoder_dim, vocab_size, attention_dim)
    features = jax.random.normal(kf, (B, R, encoder_dim), dtype=jnp.float32)
    captions = jax.random.randint(kc, (B, T), 0, vocab_size, dtype=jnp.int32)

    out = caption_generator_forward(features, captions, params)
    out = jax.block_until_ready(out)
    assert out.shape == (B, T, vocab_size)

    # f32 reference; tolerance loosened because kernel uses bf16 MXU operands.
    ref = reference_forward(features, captions, params)
    np.testing.assert_allclose(np.asarray(out), np.asarray(ref), rtol=5e-2, atol=5e-2)
    print("KERNEL_OK")
</pallas_src>

<mosaic_0001>
module attributes {stable_mosaic.version = 11 : i64} {
  func.func @caption_rnn_kernel(%arg0: i32, %arg1: memref<8x16x64xbf16, #tpu.memory_space<vmem>>, %arg2: memref<8x8x32xbf16, #tpu.memory_space<vmem>>, %arg3: memref<64x32xbf16, #tpu.memory_space<vmem>>, %arg4: memref<1x32xf32, #tpu.memory_space<vmem>>, %arg5: memref<64x32xbf16, #tpu.memory_space<vmem>>, %arg6: memref<1x32xf32, #tpu.memory_space<vmem>>, %arg7: memref<64x32xbf16, #tpu.memory_space<vmem>>, %arg8: memref<1x32xf32, #tpu.memory_space<vmem>>, %arg9: memref<32x32xbf16, #tpu.memory_space<vmem>>, %arg10: memref<1x32xf32, #tpu.memory_space<vmem>>, %arg11: memref<1x32xf32, #tpu.memory_space<vmem>>, %arg12: memref<1x1xf32, #tpu.memory_space<vmem>>, %arg13: memref<32x128xbf16, #tpu.memory_space<vmem>>, %arg14: memref<64x128xbf16, #tpu.memory_space<vmem>>, %arg15: memref<1x128xf32, #tpu.memory_space<vmem>>, %arg16: memref<32x128xbf16, #tpu.memory_space<vmem>>, %arg17: memref<1x128xf32, #tpu.memory_space<vmem>>, %arg18: memref<8x8x32xbf16, #tpu.memory_space<vmem>>) attributes {dimension_semantics = [#tpu.dimension_semantics<parallel>], iteration_bounds = array<i64: 1>, scalar_prefetch = 0 : i64, scratch_operands = 0 : i64, tpu.core_type = #tpu.core_type<tc>, window_params = [{transform_indices = @transform_0, window_bounds = array<i64: 8, 16, 64>}, {transform_indices = @transform_1, window_bounds = array<i64: 8, 8, 32>}, {pipeline_mode = #tpu.pipeline_mode<synchronous>, transform_indices = @transform_2, window_bounds = array<i64: 64, 32>}, {pipeline_mode = #tpu.pipeline_mode<synchronous>, transform_indices = @transform_3, window_bounds = array<i64: 1, 32>}, {pipeline_mode = #tpu.pipeline_mode<synchronous>, transform_indices = @transform_4, window_bounds = array<i64: 64, 32>}, {pipeline_mode = #tpu.pipeline_mode<synchronous>, transform_indices = @transform_5, window_bounds = array<i64: 1, 32>}, {pipeline_mode = #tpu.pipeline_mode<synchronous>, transform_indices = @transform_6, window_bounds = array<i64: 64, 32>}, {pipeline_mode = #tpu.pipeline_mode<synchronous>, transform_indices = @transform_7, window_bounds = array<i64: 1, 32>}, {pipeline_mode = #tpu.pipeline_mode<synchronous>, transform_indices = @transform_8, window_bounds = array<i64: 32, 32>}, {pipeline_mode = #tpu.pipeline_mode<synchronous>, transform_indices = @transform_9, window_bounds = array<i64: 1, 32>}, {pipeline_mode = #tpu.pipeline_mode<synchronous>, transform_indices = @transform_10, window_bounds = array<i64: 1, 32>}, {pipeline_mode = #tpu.pipeline_mode<synchronous>, transform_indices = @transform_11, window_bounds = array<i64: 1, 1>}, {pipeline_mode = #tpu.pipeline_mode<synchronous>, transform_indices = @transform_12, window_bounds = array<i64: 32, 128>}, {pipeline_mode = #tpu.pipeline_mode<synchronous>, transform_indices = @transform_13, window_bounds = array<i64: 64, 128>}, {pipeline_mode = #tpu.pipeline_mode<synchronous>, transform_indices = @transform_14, window_bounds = array<i64: 1, 128>}, {pipeline_mode = #tpu.pipeline_mode<synchronous>, transform_indices = @transform_15, window_bounds = array<i64: 32, 128>}, {pipeline_mode = #tpu.pipeline_mode<synchronous>, transform_indices = @transform_16, window_bounds = array<i64: 1, 128>}, {transform_indices = @transform_17, window_bounds = array<i64: 8, 8, 32>}]} {
    %c0 = arith.constant 0 : index
    %c0_0 = arith.constant 0 : index
    %c0_1 = arith.constant 0 : index
    %0 = vector.load %arg1[%c0, %c0_0, %c0_1] : memref<8x16x64xbf16, #tpu.memory_space<vmem>>, vector<8x16x64xbf16>
    %1 = arith.extf %0 : vector<8x16x64xbf16> to vector<8x16x64xf32>
    %cst = arith.constant dense<0.000000e+00> : vector<8x64xf32>
    %2 = vector.multi_reduction <add>, %1, %cst [1] : vector<8x16x64xf32> to vector<8x64xf32>
    %cst_2 = arith.constant 1.600000e+01 : f32
    %3 = vector.broadcast %cst_2 : f32 to vector<8x64xf32>
    %4 = arith.divf %2, %3 : vector<8x64xf32>
    %5 = arith.truncf %4 : vector<8x64xf32> to vector<8x64xbf16>
    %c0_3 = arith.constant 0 : index
    %c0_4 = arith.constant 0 : index
    %6 = vector.load %arg3[%c0_3, %c0_4] : memref<64x32xbf16, #tpu.memory_space<vmem>>, vector<64x32xbf16>
    %cst_5 = arith.constant dense<0.000000e+00> : vector<8x32xf32>
    %7 = tpu.matmul %5, %6, %cst_5 {dimension_numbers = #tpu.dot_dimension_numbers<[1], [0], [0], [1], [0, 0, 1, 1], [], []>} : vector<8x64xbf16>, vector<64x32xbf16>, vector<8x32xf32> -> vector<8x32xf32>
    %c0_6 = arith.constant 0 : index
    %c0_7 = arith.constant 0 : index
    %8 = vector.load %arg4[%c0_6, %c0_7] : memref<1x32xf32, #tpu.memory_space<vmem>>, vector<1x32xf32>
    %9 = vector.broadcast %8 : vector<1x32xf32> to vector<8x32xf32>
    %10 = arith.addf %7, %9 : vector<8x32xf32>
    %c0_8 = arith.constant 0 : index
    %c0_9 = arith.constant 0 : index
    %11 = vector.load %arg5[%c0_8, %c0_9] : memref<64x32xbf16, #tpu.memory_space<vmem>>, vector<64x32xbf16>
    %cst_10 = arith.constant dense<0.000000e+00> : vector<8x32xf32>
    %12 = tpu.matmul %5, %11, %cst_10 {dimension_numbers = #tpu.dot_dimension_numbers<[1], [0], [0], [1], [0, 0, 1, 1], [], []>} : vector<8x64xbf16>, vector<64x32xbf16>, vector<8x32xf32> -> vector<8x32xf32>
    %c0_11 = arith.constant 0 : index
    %c0_12 = arith.constant 0 : index
    %13 = vector.load %arg6[%c0_11, %c0_12] : memref<1x32xf32, #tpu.memory_space<vmem>>, vector<1x32xf32>
    %14 = vector.broadcast %13 : vector<1x32xf32> to vector<8x32xf32>
    %15 = arith.addf %12, %14 : vector<8x32xf32>
    %16 = vector.shape_cast %0 : vector<8x16x64xbf16> to vector<128x64xbf16>
    %c0_13 = arith.constant 0 : index
    %c0_14 = arith.constant 0 : index
    %17 = vector.load %arg7[%c0_13, %c0_14] : memref<64x32xbf16, #tpu.memory_space<vmem>>, vector<64x32xbf16>
    %cst_15 = arith.constant dense<0.000000e+00> : vector<128x32xf32>
    %18 = tpu.matmul %16, %17, %cst_15 {dimension_numbers = #tpu.dot_dimension_numbers<[1], [0], [0], [1], [0, 0, 1, 1], [], []>} : vector<128x64xbf16>, vector<64x32xbf16>, vector<128x32xf32> -> vector<128x32xf32>
    %19 = vector.shape_cast %18 : vector<128x32xf32> to vector<8x16x32xf32>
    %c0_16 = arith.constant 0 : index
    %c0_17 = arith.constant 0 : index
    %20 = vector.load %arg8[%c0_16, %c0_17] : memref<1x32xf32, #tpu.memory_space<vmem>>, vector<1x32xf32>
    %21 = vector.shape_cast %20 : vector<1x32xf32> to vector<1x1x32xf32>
    %22 = vector.broadcast %21 : vector<1x1x32xf32> to vector<8x16x32xf32>
    %23 = arith.addf %19, %22 : vector<8x16x32xf32>
    %24 = arith.truncf %23 : vector<8x16x32xf32> to vector<8x16x32xbf16>
    %c0_18 = arith.constant 0 : index
    %c0_19 = arith.constant 0 : index
    %25 = vector.load %arg9[%c0_18, %c0_19] : memref<32x32xbf16, #tpu.memory_space<vmem>>, vector<32x32xbf16>
    %c0_20 = arith.constant 0 : index
    %c0_21 = arith.constant 0 : index
    %26 = vector.load %arg10[%c0_20, %c0_21] : memref<1x32xf32, #tpu.memory_space<vmem>>, vector<1x32xf32>
    %c0_22 = arith.constant 0 : index
    %c0_23 = arith.constant 0 : index
    %27 = vector.load %arg11[%c0_22, %c0_23] : memref<1x32xf32, #tpu.memory_space<vmem>>, vector<1x32xf32>
    %c0_24 = arith.constant 0 : index
    %c0_25 = arith.constant 0 : index
    %28 = vector.load %arg12[%c0_24, %c0_25] : memref<1x1xf32, #tpu.memory_space<vmem>>, vector<1x1xf32>
    %c0_26 = arith.constant 0 : index
    %c0_27 = arith.constant 0 : index
    %29 = vector.load %arg13[%c0_26, %c0_27] : memref<32x128xbf16, #tpu.memory_space<vmem>>, vector<32x128xbf16>
    %c0_28 = arith.constant 0 : index
    %c0_29 = arith.constant 0 : index
    %30 = vector.load %arg14[%c0_28, %c0_29] : memref<64x128xbf16, #tpu.memory_space<vmem>>, vector<64x128xbf16>
    %c0_30 = arith.constant 0 : index
    %c0_31 = arith.constant 0 : index
    %31 = vector.load %arg16[%c0_30, %c0_31] : memref<32x128xbf16, #tpu.memory_space<vmem>>, vector<32x128xbf16>
    %c0_32 = arith.constant 0 : index
    %c0_33 = arith.constant 0 : index
    %32 = vector.load %arg15[%c0_32, %c0_33] : memref<1x128xf32, #tpu.memory_space<vmem>>, vector<1x128xf32>
    %c0_34 = arith.constant 0 : index
    %c0_35 = arith.constant 0 : index
    %33 = vector.load %arg17[%c0_34, %c0_35] : memref<1x128xf32, #tpu.memory_space<vmem>>, vector<1x128xf32>
    %34 = arith.addf %32, %33 : vector<1x128xf32>
    %c0_i32 = arith.constant 0 : i32
    %c8_i32 = arith.constant 8 : i32
    %35 = arith.addi %c0_i32, %c8_i32 : i32
    %c1_i32 = arith.constant 1 : i32
    %36:2 = scf.for %arg19 = %c0_i32 to %35 step %c1_i32 iter_args(%arg20 = %10, %arg21 = %15) -> (vector<8x32xf32>, vector<8x32xf32>)  : i32 {
      %37 = arith.truncf %arg20 : vector<8x32xf32> to vector<8x32xbf16>
      %cst_37 = arith.constant dense<0.000000e+00> : vector<8x32xf32>
      %38 = tpu.matmul %37, %25, %cst_37 {dimension_numbers = #tpu.dot_dimension_numbers<[1], [0], [0], [1], [0, 0, 1, 1], [], []>} : vector<8x32xbf16>, vector<32x32xbf16>, vector<8x32xf32> -> vector<8x32xf32>
      %39 = vector.broadcast %26 : vector<1x32xf32> to vector<8x32xf32>
      %40 = arith.addf %38, %39 : vector<8x32xf32>
      %41 = arith.extf %24 : vector<8x16x32xbf16> to vector<8x16x32xf32>
      %42 = vector.shape_cast %40 : vector<8x32xf32> to vector<8x1x32xf32>
      %43 = vector.broadcast %42 : vector<8x1x32xf32> to vector<8x16x32xf32>
      %44 = arith.addf %41, %43 : vector<8x16x32xf32>
      %45 = math.tanh %44 : vector<8x16x32xf32>
      %46 = vector.shape_cast %27 : vector<1x32xf32> to vector<1x1x32xf32>
      %47 = vector.broadcast %46 : vector<1x1x32xf32> to vector<8x16x32xf32>
      %48 = arith.mulf %45, %47 : vector<8x16x32xf32>
      %cst_38 = arith.constant dense<0.000000e+00> : vector<8x16xf32>
      %49 = vector.multi_reduction <add>, %48, %cst_38 [2] : vector<8x16x32xf32> to vector<8x16xf32>
      %50 = vector.broadcast %28 : vector<1x1xf32> to vector<8x16xf32>
      %51 = arith.addf %49, %50 : vector<8x16xf32>
      %cst_39 = arith.constant dense<0xFF800000> : vector<8xf32>
      %52 = vector.multi_reduction <maximumf>, %51, %cst_39 [1] : vector<8x16xf32> to vector<8xf32>
      %53 = vector.shape_cast %52 : vector<8xf32> to vector<8x1xf32>
      %54 = vector.broadcast %53 : vector<8x1xf32> to vector<8x16xf32>
      %55 = arith.subf %51, %54 : vector<8x16xf32>
      %56 = math.exp %55 : vector<8x16xf32>
      %cst_40 = arith.constant dense<0.000000e+00> : vector<8xf32>
      %57 = vector.multi_reduction <add>, %56, %cst_40 [1] : vector<8x16xf32> to vector<8xf32>
      %58 = vector.shape_cast %57 : vector<8xf32> to vector<8x1xf32>
      %59 = tpu.reciprocal %58 {approx = true} : vector<8x1xf32> -> vector<8x1xf32>
      %60 = vector.broadcast %59 : vector<8x1xf32> to vector<8x16xf32>
      %61 = arith.mulf %56, %60 : vector<8x16xf32>
      %62 = arith.truncf %61 : vector<8x16xf32> to vector<8x16xbf16>
      %63 = vector.shape_cast %62 : vector<8x16xbf16> to vector<8x1x16xbf16>
      "tpu.trace_start"() <{level = 10 : i32, message = "bqr,bre->bqe"}> : () -> ()
      %cst_41 = arith.constant dense<0.000000e+00> : vector<8x1x64xf32>
      %64 = tpu.matmul %63, %0, %cst_41 {dimension_numbers = #tpu.dot_dimension_numbers<[2], [1], [1], [2], [0, 0, 0, 1, 1, 2], [0], [0]>} : vector<8x1x16xbf16>, vector<8x16x64xbf16>, vector<8x1x64xf32> -> vector<8x1x64xf32>
      "tpu.trace_stop"() : () -> ()
      %65 = vector.shape_cast %64 : vector<8x1x64xf32> to vector<8x64xf32>
      %66 = arith.index_cast %arg19 : i32 to index
      %c0_42 = arith.constant 0 : index
      %c0_43 = arith.constant 0 : index
      %67 = vector.load %arg2[%66, %c0_42, %c0_43] : memref<8x8x32xbf16, #tpu.memory_space<vmem>>, vector<1x8x32xbf16>
      %68 = vector.shape_cast %67 : vector<1x8x32xbf16> to vector<8x32xbf16>
      %cst_44 = arith.constant dense<0.000000e+00> : vector<8x128xf32>
      %69 = tpu.matmul %68, %29, %cst_44 {dimension_numbers = #tpu.dot_dimension_numbers<[1], [0], [0], [1], [0, 0, 1, 1], [], []>} : vector<8x32xbf16>, vector<32x128xbf16>, vector<8x128xf32> -> vector<8x128xf32>
      %70 = arith.truncf %65 : vector<8x64xf32> to vector<8x64xbf16>
      %cst_45 = arith.constant dense<0.000000e+00> : vector<8x128xf32>
      %71 = tpu.matmul %70, %30, %cst_45 {dimension_numbers = #tpu.dot_dimension_numbers<[1], [0], [0], [1], [0, 0, 1, 1], [], []>} : vector<8x64xbf16>, vector<64x128xbf16>, vector<8x128xf32> -> vector<8x128xf32>
      %72 = arith.addf %69, %71 : vector<8x128xf32>
      %73 = arith.truncf %arg20 : vector<8x32xf32> to vector<8x32xbf16>
      %cst_46 = arith.constant dense<0.000000e+00> : vector<8x128xf32>
      %74 = tpu.matmul %73, %31, %cst_46 {dimension_numbers = #tpu.dot_dimension_numbers<[1], [0], [0], [1], [0, 0, 1, 1], [], []>} : vector<8x32xbf16>, vector<32x128xbf16>, vector<8x128xf32> -> vector<8x128xf32>
      %75 = arith.addf %72, %74 : vector<8x128xf32>
      %76 = vector.broadcast %34 : vector<1x128xf32> to vector<8x128xf32>
      %77 = arith.addf %75, %76 : vector<8x128xf32>
      %78 = vector.extract_strided_slice %77 {offsets = [0, 0], sizes = [8, 32], strides = [1, 1]} : vector<8x128xf32> to vector<8x32xf32>
      %79 = arith.negf %78 : vector<8x32xf32>
      %80 = math.exp %79 : vector<8x32xf32>
      %cst_47 = arith.constant 1.000000e+00 : f32
      %81 = vector.broadcast %cst_47 : f32 to vector<8x32xf32>
      %82 = arith.addf %81, %80 : vector<8x32xf32>
      %83 = arith.divf %81, %82 : vector<8x32xf32>
      %84 = vector.extract_strided_slice %77 {offsets = [0, 32], sizes = [8, 32], strides = [1, 1]} : vector<8x128xf32> to vector<8x32xf32>
      %85 = arith.negf %84 : vector<8x32xf32>
      %86 = math.exp %85 : vector<8x32xf32>
      %cst_48 = arith.constant 1.000000e+00 : f32
      %87 = vector.broadcast %cst_48 : f32 to vector<8x32xf32>
      %88 = arith.addf %87, %86 : vector<8x32xf32>
      %89 = arith.divf %87, %88 : vector<8x32xf32>
      %90 = vector.extract_strided_slice %77 {offsets = [0, 64], sizes = [8, 32], strides = [1, 1]} : vector<8x128xf32> to vector<8x32xf32>
      %91 = math.tanh %90 : vector<8x32xf32>
      %92 = vector.extract_strided_slice %77 {offsets = [0, 96], sizes = [8, 32], strides = [1, 1]} : vector<8x128xf32> to vector<8x32xf32>
      %93 = arith.negf %92 : vector<8x32xf32>
      %94 = math.exp %93 : vector<8x32xf32>
      %cst_49 = arith.constant 1.000000e+00 : f32
      %95 = vector.broadcast %cst_49 : f32 to vector<8x32xf32>
      %96 = arith.addf %95, %94 : vector<8x32xf32>
      %97 = arith.divf %95, %96 : vector<8x32xf32>
      %98 = arith.mulf %89, %arg21 : vector<8x32xf32>
      %99 = arith.mulf %83, %91 : vector<8x32xf32>
      %100 = arith.addf %98, %99 : vector<8x32xf32>
      %101 = math.tanh %100 : vector<8x32xf32>
      %102 = arith.mulf %97, %101 : vector<8x32xf32>
      %103 = arith.truncf %102 : vector<8x32xf32> to vector<8x32xbf16>
      %104 = arith.index_cast %arg19 : i32 to index
      %c0_50 = arith.constant 0 : index
      %c0_51 = arith.constant 0 : index
      %105 = vector.load %arg18[%104, %c0_50, %c0_51] : memref<8x8x32xbf16, #tpu.memory_space<vmem>>, vector<1x8x32xbf16>
      %106 = vector.shape_cast %105 : vector<1x8x32xbf16> to vector<8x32xbf16>
      %107 = vector.shape_cast %103 : vector<8x32xbf16> to vector<1x8x32xbf16>
      tpu.vector_store %arg18[%104, %c0_50, %c0_51], %107 {strides = array<i32>} : memref<8x8x32xbf16, #tpu.memory_space<vmem>>, vector<1x8x32xbf16>,
      scf.yield %102, %100 : vector<8x32xf32>, vector<8x32xf32>
    }
    %c8_i32_36 = arith.constant 8 : i32
    return
  }
  func.func @transform_0(%arg0: i32) -> (i32, i32, i32) {
    %c0_i32 = arith.constant 0 : i32
    %c0_i32_0 = arith.constant 0 : i32
    %c0_i32_1 = arith.constant 0 : i32
    return %arg0, %c0_i32, %c0_i32_0 : i32, i32, i32
  }
  func.func @transform_1(%arg0: i32) -> (i32, i32, i32) {
    %c0_i32 = arith.constant 0 : i32
    %c0_i32_0 = arith.constant 0 : i32
    %c0_i32_1 = arith.constant 0 : i32
    return %c0_i32, %arg0, %c0_i32_0 : i32, i32, i32
  }
  func.func @transform_2(%arg0: i32) -> (i32, i32) {
    %c0_i32 = arith.constant 0 : i32
    %c0_i32_0 = arith.constant 0 : i32
    %c0_i32_1 = arith.constant 0 : i32
    return %c0_i32, %c0_i32_0 : i32, i32
  }
  func.func @transform_3(%arg0: i32) -> (i32, i32) {
    %c0_i32 = arith.constant 0 : i32
    %c0_i32_0 = arith.constant 0 : i32
    %c0_i32_1 = arith.constant 0 : i32
    return %c0_i32, %c0_i32_0 : i32, i32
  }
  func.func @transform_4(%arg0: i32) -> (i32, i32) {
    %c0_i32 = arith.constant 0 : i32
    %c0_i32_0 = arith.constant 0 : i32
    %c0_i32_1 = arith.constant 0 : i32
    return %c0_i32, %c0_i32_0 : i32, i32
  }
  func.func @transform_5(%arg0: i32) -> (i32, i32) {
    %c0_i32 = arith.constant 0 : i32
    %c0_i32_0 = arith.constant 0 : i32
    %c0_i32_1 = arith.constant 0 : i32
    return %c0_i32, %c0_i32_0 : i32, i32
  }
  func.func @transform_6(%arg0: i32) -> (i32, i32) {
    %c0_i32 = arith.constant 0 : i32
    %c0_i32_0 = arith.constant 0 : i32
    %c0_i32_1 = arith.constant 0 : i32
    return %c0_i32, %c0_i32_0 : i32, i32
  }
  func.func @transform_7(%arg0: i32) -> (i32, i32) {
    %c0_i32 = arith.constant 0 : i32
    %c0_i32_0 = arith.constant 0 : i32
    %c0_i32_1 = arith.constant 0 : i32
    return %c0_i32, %c0_i32_0 : i32, i32
  }
  func.func @transform_8(%arg0: i32) -> (i32, i32) {
    %c0_i32 = arith.constant 0 : i32
    %c0_i32_0 = arith.constant 0 : i32
    %c0_i32_1 = arith.constant 0 : i32
    return %c0_i32, %c0_i32_0 : i32, i32
  }
  func.func @transform_9(%arg0: i32) -> (i32, i32) {
    %c0_i32 = arith.constant 0 : i32
    %c0_i32_0 = arith.constant 0 : i32
    %c0_i32_1 = arith.constant 0 : i32
    return %c0_i32, %c0_i32_0 : i32, i32
  }
  func.func @transform_10(%arg0: i32) -> (i32, i32) {
    %c0_i32 = arith.constant 0 : i32
    %c0_i32_0 = arith.constant 0 : i32
    %c0_i32_1 = arith.constant 0 : i32
    return %c0_i32, %c0_i32_0 : i32, i32
  }
  func.func @transform_11(%arg0: i32) -> (i32, i32) {
    %c0_i32 = arith.constant 0 : i32
    %c0_i32_0 = arith.constant 0 : i32
    %c0_i32_1 = arith.constant 0 : i32
    return %c0_i32, %c0_i32_0 : i32, i32
  }
  func.func @transform_12(%arg0: i32) -> (i32, i32) {
    %c0_i32 = arith.constant 0 : i32
    %c0_i32_0 = arith.constant 0 : i32
    %c0_i32_1 = arith.constant 0 : i32
    return %c0_i32, %c0_i32_0 : i32, i32
  }
  func.func @transform_13(%arg0: i32) -> (i32, i32) {
    %c0_i32 = arith.constant 0 : i32
    %c0_i32_0 = arith.constant 0 : i32
    %c0_i32_1 = arith.constant 0 : i32
    return %c0_i32, %c0_i32_0 : i32, i32
  }
  func.func @transform_14(%arg0: i32) -> (i32, i32) {
    %c0_i32 = arith.constant 0 : i32
    %c0_i32_0 = arith.constant 0 : i32
    %c0_i32_1 = arith.constant 0 : i32
    return %c0_i32, %c0_i32_0 : i32, i32
  }
  func.func @transform_15(%arg0: i32) -> (i32, i32) {
    %c0_i32 = arith.constant 0 : i32
    %c0_i32_0 = arith.constant 0 : i32
    %c0_i32_1 = arith.constant 0 : i32
    return %c0_i32, %c0_i32_0 : i32, i32
  }
  func.func @transform_16(%arg0: i32) -> (i32, i32) {
    %c0_i32 = arith.constant 0 : i32
    %c0_i32_0 = arith.constant 0 : i32
    %c0_i32_1 = arith.constant 0 : i32
    return %c0_i32, %c0_i32_0 : i32, i32
  }
  func.func @transform_17(%arg0: i32) -> (i32, i32, i32) {
    %c0_i32 = arith.constant 0 : i32
    %c0_i32_0 = arith.constant 0 : i32
    %c0_i32_1 = arith.constant 0 : i32
    return %c0_i32, %arg0, %c0_i32_0 : i32, i32, i32
  }
}

</mosaic_0001>

<bundles_post_ra>
// kernel: tpu_custom_call.1
= control target key start
LH: loop header
LB: loop body
LE: loop exit
PB: predicated region body
PF: predicated region fallthrough
CT: control target
= control target key end

     0   :  { %s3588_s0 = inlined_call_operand.vmem [shape: bf16[8,16,64], index: 0, kind: input, shape index: {}]   ;;  %s3589_s1 = inlined_call_operand.vmem [shape: bf16[8,8,32], index: 1, kind: input, shape index: {}]   ;;  %s3590_s2 = inlined_call_operand.vmem [shape: bf16[64,32], index: 2, kind: input, shape index: {}]   ;;  %s3591_s3 = inlined_call_operand.hbm [shape: f32[1,32], index: 3, kind: input, shape index: {}]   ;;  %s3592_s4 = inlined_call_operand.vmem [shape: bf16[64,32], index: 4, kind: input, shape index: {}]   ;;  %s3593_s5 = inlined_call_operand.hbm [shape: f32[1,32], index: 5, kind: input, shape index: {}]   ;;  %s3594_s6 = inlined_call_operand.vmem [shape: bf16[64,32], index: 6, kind: input, shape index: {}]   ;;  %s3595_s7 = inlined_call_operand.hbm [shape: f32[1,32], index: 7, kind: input, shape index: {}]   ;;  %s3596_s8 = inlined_call_operand.vmem [shape: bf16[32,32], index: 8, kind: input, shape index: {}]   ;;  %s3597_s9 = inlined_call_operand.vmem [shape: f32[1,32], index: 9, kind: input, shape index: {}]   ;;  %s3598_s10 = inlined_call_operand.vmem [shape: f32[1,32], index: 10, kind: input, shape index: {}]   ;;  %s3599_s11 = inlined_call_operand.<no memory space> [shape: f32[1,1], index: 11, kind: input, shape index: {}]   ;;  %s3600_s12 = inlined_call_operand.hbm [shape: bf16[32,128], index: 12, kind: input, shape index: {}]   ;;  %s3601_s13 = inlined_call_operand.vmem [shape: bf16[64,128], index: 13, kind: input, shape index: {}]   ;;  %s3602_s14 = inlined_call_operand.vmem [shape: f32[1,128], index: 14, kind: input, shape index: {}]   ;;  %s3603_s15 = inlined_call_operand.hbm [shape: bf16[32,128], index: 15, kind: input, shape index: {}]   ;;  %s3604_s16 = inlined_call_operand.vmem [shape: f32[1,128], index: 16, kind: input, shape index: {}]   ;;  %s3605_s17 = inlined_call_operand.hbm [shape: bf16[8,8,32], index: 17, kind: output, shape index: {}]  }
   0x1   :  { %3629 = sst [smem:[#allocation39_spill]] %s3588_s0  ;;  %v22_v0 = vstv %s3599_s11 }
   0x2   :  { %3630 = sst [smem:[#allocation40_spill]] %s3589_s1  ;;  %23 = vst [vmem:[#allocation2] sm:$0x1] %v22_v0 }
   0x3   :  { %24 = vsyncpa [#allocation4], 0 }
   0x4   :  { %25 = vsyncpa [#allocation7], 0 }
   0x5   :  { %26 = vsyncpa [#allocation10], 0 }
   0x6   :  { %27 = vsyncpa [#allocation5], 0  ;;  %s2749_s26 = smov [#allocation6]   ;;  %s2750_s28 = smov [#allocation9]  }
   0x7   :  { %s52_s27 = sshll.u32 %s2749_s26, 4  ;;  %s81_s29 = sshll.u32 %s2750_s28, 4  ;;  %s53_s27 = int_to_ptr.vmem [resolvable:$true] %s52_s27  ;;  %s82_s29 = int_to_ptr.vmem [resolvable:$true] %s81_s29 }
   0x8   :  { %s2605_s0 = scalar_lea.vmem %s53_s27, 16  ;;  %s2609_s30 = scalar_lea.vmem %s53_s27, 32 }
   0x9   :  { %p2606_p0 = scmp.ne.s32.totalorder %s53_s27, %s2605_s0  ;;  %p2610_p1 = scmp.lt.s32.totalorder %s53_s27, %s53_s27 }
   0xa   :  { %p2611_p2 = scmp.lt.s32.totalorder %s2609_s30, %s2605_s0 }
   0xc   :  { %p2612_p3 = por %p2611_p2, %p2610_p1 }
   0xe   :  { %p2613_p4 = pnand %p2612_p3, %p2606_p0 }
  0x10   :  { %2616 = shalt.err (!%p2613_p4)
}
  0x11   :  { %55 = dma.hbm_to_vmem [thread:$0]  %s3593_s5, 16, %s53_s27, [#allocation7]  }
  0x12   :  { %s2625_s19 = scalar_lea.vmem %s82_s29, 256  ;;  %p2630_p6 = scmp.lt.s32.totalorder %s82_s29, %s82_s29 }
  0x13   :  { %p2626_p5 = scmp.ne.s32.totalorder %s82_s29, %s2625_s19  ;;  %p2631_p7 = scmp.lt.s32.totalorder %s2625_s19, %s2625_s19 }
  0x15   :  { %p2632_p8 = por %p2631_p7, %p2630_p6 }
  0x17   :  { %p2633_p9 = pnand %p2632_p8, %p2626_p5 }
  0x19   :  { %2636 = shalt.err (!%p2633_p9)
}
  0x1a   :  { %s2751_s1 = smov 64   ;;  %s2752_s20 = smov 4  }
  0x1b   :  { %87 = dma.hbm_to_vmem [thread:$0]  %s3600_s12, 256, %s82_s29, [#allocation10], %s2751_s1, %s2751_s1, %s2752_s20  }
  0x1c   :  { %s2753_s23 = smov [#allocation3]   ;;  %s2754_s25 = smov [#allocation8]  }
  0x1d   :  { %s40_s24 = sshll.u32 %s2753_s23, 4  ;;  %s64_s5 = sshll.u32 %s2754_s25, 4  ;;  %s41_s24 = int_to_ptr.vmem [resolvable:$true] %s40_s24  ;;  %s65_s5 = int_to_ptr.vmem [resolvable:$true] %s64_s5 }
  0x1e   :  { %s2645_s26 = scalar_lea.vmem %s41_s24, 16  ;;  %s2649_s27 = scalar_lea.vmem %s41_s24, 32 }
  0x1f   :  { %p2646_p10 = scmp.ne.s32.totalorder %s41_s24, %s2645_s26  ;;  %p2650_p11 = scmp.lt.s32.totalorder %s41_s24, %s41_s24 }
  0x20   :  { %p2651_p12 = scmp.lt.s32.totalorder %s2649_s27, %s2645_s26 }
  0x22   :  { %p2652_p13 = por %p2651_p12, %p2650_p11 }
  0x24   :  { %p2653_p0 = pnand %p2652_p13, %p2646_p10 }
  0x26   :  { %2656 = shalt.err (!%p2653_p0)
}
  0x27   :  { %43 = dma.hbm_to_vmem [thread:$0]  %s3591_s3, 16, %s41_s24, [#allocation4]  }
  0x28   :  { %s2665_s30 = scalar_lea.vmem %s65_s5, 16  ;;  %s2669_s12 = scalar_lea.vmem %s65_s5, 32 }
  0x29   :  { %p2666_p1 = scmp.ne.s32.totalorder %s65_s5, %s2665_s30  ;;  %p2670_p2 = scmp.lt.s32.totalorder %s65_s5, %s65_s5 }
  0x2a   :  { %p2671_p3 = scmp.lt.s32.totalorder %s2669_s12, %s2665_s30 }
  0x2c   :  { %p2672_p4 = por %p2671_p3, %p2670_p2 }
  0x2e   :  { %p2673_p5 = pnand %p2672_p4, %p2666_p1 }
  0x30   :  { %2676 = shalt.err (!%p2673_p5)
}
  0x31   :  { %67 = dma.hbm_to_vmem [thread:$0]  %s3595_s7, 16, %s65_s5, [#allocation7]  }
  0x32   :  { %s2755_s18 = smov [#allocation11]  }
  0x33   :  { %s97_s19 = sshll.u32 %s2755_s18, 4  ;;  %s98_s19 = int_to_ptr.vmem [resolvable:$true] %s97_s19 }
  0x34   :  { %s2685_s21 = scalar_lea.vmem %s98_s19, 256  ;;  %p2690_p7 = scmp.lt.s32.totalorder %s98_s19, %s98_s19 }
  0x35   :  { %p2686_p6 = scmp.ne.s32.totalorder %s98_s19, %s2685_s21  ;;  %p2691_p8 = scmp.lt.s32.totalorder %s2685_s21, %s2685_s21 }
  0x37   :  { %p2692_p9 = por %p2691_p8, %p2690_p7 }
  0x39   :  { %p2693_p10 = pnand %p2692_p9, %p2686_p6 }
  0x3b   :  { %2696 = shalt.err (!%p2693_p10)
}
  0x3c   :  { %103 = dma.hbm_to_vmem [thread:$0]  %s3603_s15, 256, %s98_s19, [#allocation10], %s2751_s1, %s2751_s1, %s2752_s20  }
  0x3d   :  { %2729 = dma.done.wait [#allocation4], 16  }
  0x3e   :  { %2730 = vsyncadd [#allocation4], 4294967280 }
  0x3f   :  { %2731 = dma.done.wait [#allocation7], 32  }
  0x40   :  { %2732 = vsyncadd [#allocation7], 4294967264 }
  0x41   :  { %2733 = dma.done.wait [#allocation10], 512  }
  0x42   :  { %2734 = vsyncadd [#allocation10], 4294966784  ;;  %v2756_v1 = vmov 0.0   ;;  %vm2757_vm0 = vmmov 0   ;;  %v2886_v2 = vld [vmem:[%s3596_s8] sm:$0xf] }
  0x43   :  { %2320 = vmatprep.subr.bf16.mxu1 %v2756_v1  ;;  %2328 = vmatprep.mubr.msk.bf16.mxu1 %vm2757_vm0, %v2756_v1  ;;  %3631 = vst [vmem:[#allocation17_spill] sm:$0xff] %v2886_v2  ;;  %v2891_v3 = vld [vmem:[%s3596_s8 + $0x4] sm:$0xf]  ;;  %v2896_v4 = vld [vmem:[%s3596_s8 + $0x8] sm:$0xf]  ;;  %v2493_v28 = vld [vmem:[%s3594_s6 + $0x18] sm:$0xff]  }
  0x44   :  { %3632 = vst [vmem:[#allocation18_spill] sm:$0xff] %v2891_v3  ;;  %3633 = vst [vmem:[#allocation19_spill] sm:$0xff] %v2896_v4  ;;  %v2901_v5 = vld [vmem:[%s3596_s8 + $0xc] sm:$0xf]  ;;  %v2906_v6 = vld [vmem:[%s3597_s9] ss:$0 sm:$0xff]  ;;  %2344 = vmatprep.subr.bf16.mxu0 %v2493_v28 }
  0x45   :  { %3634 = vst [vmem:[#allocation20_spill] sm:$0xff] %v2901_v5  ;;  %3635 = vst [vmem:[#allocation21_spill] sm:$0xff] %v2906_v6  ;;  %v2911_v7 = vld [vmem:[%s3598_s10] ss:$0 sm:$0xff]  ;;  %v2915_v9 = vld [vmem:[#allocation9] sm:$0xf]  ;;  %2345 = vmatpush3.bf16.msra.mxu0 %v2493_v28 }
  0x46   :  { %3636 = vst [vmem:[#allocation22_spill] sm:$0xff] %v2911_v7  ;;  %v2913_v8 = vld [vmem:[#allocation2] ss:$0 sm:$0xff]  ;;  %v2917_v10 = vld [vmem:[#allocation9 + $0x4] sm:$0xf]  ;;  %v2494_v29 = vld [vmem:[%s3594_s6 + $0x10] sm:$0xff]  }
  0x47   :  { %3637 = vst [vmem:[#allocation23_spill] sm:$0xff] %v2913_v8  ;;  %v2919_v11 = vld [vmem:[#allocation9 + $0x8] sm:$0xf]  ;;  %v2921_v12 = vld [vmem:[#allocation9 + $0xc] sm:$0xf]  ;;  %2346 = vmatprep.subr.bf16.mxu0 %v2494_v29  ;;  %v2497_v31 = vld [vmem:[%s3590_s2 + $0x18] sm:$0xff]  }
  0x48   :  { %v2926_v13 = vld [vmem:[%s3601_s13] sm:$0xf]  ;;  %v2931_v14 = vld [vmem:[%s3601_s13 + $0x4] sm:$0xf]  ;;  %v2936_v15 = vld [vmem:[%s3601_s13 + $0x8] sm:$0xf]  ;;  %2321 = vmatpush3.bf16.msra.mxu1 %v2497_v31 }
  0x49   :  { %3638 = vst [vmem:[#allocation24_spill] sm:$0xff] %v2926_v13  ;;  %3639 = vst [vmem:[#allocation25_spill] sm:$0xff] %v2931_v14  ;;  %v2941_v16 = vld [vmem:[%s3601_s13 + $0xc] sm:$0xf]  ;;  %v2946_v17 = vld [vmem:[%s3601_s13 + $0x10] sm:$0xf]  ;;  %2347 = vmatpush3.bf16.msra.mxu0 %v2494_v29  ;;  %2322 = vmatprep.subr.bf16.mxu1 %v2756_v1 }
  0x4a   :  { %v2951_v18 = vld [vmem:[%s3601_s13 + $0x14] sm:$0xf]  ;;  %v2956_v19 = vld [vmem:[%s3601_s13 + $0x18] sm:$0xf]  ;;  %v2961_v20 = vld [vmem:[%s3601_s13 + $0x1c] sm:$0xf] }
  0x4b   :  { %v2963_v21 = vld [vmem:[#allocation11] sm:$0xf]  ;;  %v2965_v22 = vld [vmem:[#allocation11 + $0x4] sm:$0xf]  ;;  %v2967_v23 = vld [vmem:[#allocation11 + $0x8] sm:$0xf] }
  0x4c   :  { %v2969_v24 = vld [vmem:[#allocation11 + $0xc] sm:$0xf]  ;;  %v683_v25 = vld [vmem:[%s3602_s14] sm:$0x1]  ;;  %v2495_v30 = vld [vmem:[%s3594_s6 + $0x8] sm:$0xff]   ;;  %s3641_s18 = sld [smem:[#allocation39_spill]] }
  0x4d   :  { %v684_v26 = vld [vmem:[%s3604_s16] sm:$0x1]  ;;  %vm154_vm1 = vcmask 523264   ;;  %v2500_v38 = vld [vmem:[%s3590_s2 + $0x10] sm:$0xff]   ;;  %2348 = vmatprep.subr.bf16.mxu0 %v2495_v30  ;;  %v2501_v50 = vld [vmem:[%s3590_s2 + $0x8] sm:$0xff]   ;;  %vm275_vm2 = vcmask 1041409  }
  0x4e   :  { %v2977_v27 = vadd.f32 %v684_v26, %v683_v25  ;;  %v2496_v44 = vld [vmem:[%s3594_s6] sm:$0xff]   ;;  %2323 = vmatpush3.bf16.msra.mxu1 %v2500_v38  ;;  %2349 = vmatpush3.bf16.msra.mxu0 %v2495_v30  ;;  %vm277_vm3 = vcmask 1042434   ;;  %vm279_vm4 = vcmask 1043459   ;;  %vm281_vm5 = vcmask 1044484  }
  0x4f   :  { %2324 = vmatprep.subr.bf16.mxu1 %v2756_v1  ;;  %2350 = vmatprep.subr.bf16.mxu0 %v2496_v44  ;;  %vm283_vm6 = vcmask 1045509   ;;  %vm285_vm7 = vcmask 1046534   ;;  %vm287_vm8 = vcmask 1047559  }
  0x50   :  { %3640 = vst [vmem:[#allocation26_spill] sm:$0xff] %v2977_v27 }
  0x52   :  { %v2994_v32 = vld [vmem:[%s3641_s18] sm:$0xff]   ;;  %v2999_v33 = vld [vmem:[%s3641_s18 + $0x8] sm:$0xff]   ;;  %v3016_v42 = vld [vmem:[%s3641_s18 + $0x10] sm:$0xff]   ;;  %2325 = vmatpush3.bf16.msra.mxu1 %v2501_v50  ;;  %2351 = vmatpush3.bf16.msra.mxu0 %v2496_v44 }
  0x53   :  { %3642 = vst [vmem:[#allocation27_spill] sm:$0xff] %v2994_v32  ;;  %v138_v34 = vunpack.c.l.bf16 %v2994_v32  ;;  %v139_v35 = vunpack.c.h.bf16 %v2994_v32  ;;  %v140_v36 = vunpack.c.l.bf16 %v2999_v33  ;;  %v141_v37 = vunpack.c.h.bf16 %v2999_v33  ;;  %2352 = vmatprep.mubr.msk.bf16.mxu0 %vm154_vm1, %v2994_v32  ;;  %3643 = vst [vmem:[#allocation28_spill] sm:$0xff] %v3016_v42  ;;  %v3021_v43 = vld [vmem:[%s3641_s18 + $0x18] sm:$0xff]   ;;  %v3038_v53 = vld [vmem:[%s3641_s18 + $0x20] sm:$0xff]   ;;  %2326 = vmatprep.subr.bf16.mxu1 %v2756_v1 }
  0x54   :  { %v142_v47 = vunpack.c.l.bf16 %v3016_v42  ;;  %v143_v48 = vunpack.c.h.bf16 %v3016_v42  ;;  %v144_v51 = vunpack.c.l.bf16 %v3021_v43  ;;  %v145_v52 = vunpack.c.h.bf16 %v3021_v43  ;;  %v3043_v54 = vld [vmem:[%s3641_s18 + $0x28] sm:$0xff]   ;;  %v3050_v58 = vld [vmem:[%s3641_s18 + $0x30] sm:$0xff]   ;;  %v3058_v63 = vld [vmem:[%s3641_s18 + $0x38] sm:$0xff]  }
  0x55   :  { %v155_v39 = vsel %vm154_vm1, %v138_v34, 0.0  ;;  %v156_v40 = vsel %vm154_vm1, %v139_v35, 0.0  ;;  %v164_v41 = vsel %vm154_vm1, %v140_v36, 0.0  ;;  %v165_v46 = vsel %vm154_vm1, %v141_v37, 0.0  ;;  %v2504_v37 = vld [vmem:[%s3590_s2] sm:$0xff]   ;;  %2353 = vmatmul.mubr.msk.bf16.vlgmr.msra.gmra.mxu0 %vm154_vm1, %v2999_v33 }
  0x56   :  { %v157_v45 = vadd.f32 %v156_v40, %v155_v39  ;;  %v166_v49 = vadd.f32 %v165_v46, %v164_v41  ;;  %v173_v56 = vsel %vm154_vm1, %v142_v47, 0.0  ;;  %v174_v57 = vsel %vm154_vm1, %v143_v48, 0.0  ;;  %2327 = vmatpush3.bf16.msra.mxu1 %v2504_v37  ;;  %2356 = vmatprep.mubr.msk.bf16.mxu0 %vm154_vm1, %v3016_v42 }
  0x57   :  { %v175_v60 = vadd.f32 %v174_v57, %v173_v56  ;;  %v182_v61 = vsel %vm154_vm1, %v144_v51, 0.0  ;;  %v183_v62 = vsel %vm154_vm1, %v145_v52, 0.0  ;;  %v146_v26 = vunpack.c.l.bf16 %v3038_v53  ;;  %2332 = vmatprep.subr.bf16.mxu1 %v2756_v1 }
  0x58   :  { %v158_v55 = vrot.slane %v157_v45, 4  ;;  %v167_v59 = vrot.slane %v166_v49, 4  ;;  %v184_v25 = vadd.f32 %v183_v62, %v182_v61  ;;  %v147_v28 = vunpack.c.h.bf16 %v3038_v53 }
  0x59   :  { %v176_v30 = vrot.slane %v175_v60, 4  ;;  %v148_v31 = vunpack.c.l.bf16 %v3043_v54  ;;  %v149_v34 = vunpack.c.h.bf16 %v3043_v54  ;;  %v150_v38 = vunpack.c.l.bf16 %v3050_v58 }
  0x5a   :  { %v159_v0 = vadd.f32 %v158_v55, %v157_v45  ;;  %v168_v29 = vadd.f32 %v167_v59, %v166_v49  ;;  %v185_v36 = vrot.slane %v184_v25, 4  ;;  %v151_v39 = vunpack.c.h.bf16 %v3050_v58 }
  0x5b   :  { %v177_v41 = vadd.f32 %v176_v30, %v175_v60  ;;  %v152_v45 = vunpack.c.l.bf16 %v3058_v63  ;;  %v153_v46 = vunpack.c.h.bf16 %v3058_v63  ;;  %v191_v49 = vsel %vm154_vm1, %v146_v26, 0.0 }
  0x5c   :  { %v160_v35 = vrot.slane %v159_v0, 2  ;;  %v169_v40 = vrot.slane %v168_v29, 2  ;;  %v186_v48 = vadd.f32 %v185_v36, %v184_v25  ;;  %v192_v50 = vsel %vm154_vm1, %v147_v28, 0.0 }
  0x5d   :  { %v178_v52 = vrot.slane %v177_v41, 2  ;;  %v193_v55 = vadd.f32 %v192_v50, %v191_v49  ;;  %v200_v56 = vsel %vm154_vm1, %v148_v31, 0.0  ;;  %v201_v59 = vsel %vm154_vm1, %v149_v34, 0.0  ;;  %2357 = vmatmul.mubr.msk.bf16.gmra.mxu0 %vm154_vm1, %v3021_v43 }
  0x5e   :  { %v161_v47 = vadd.f32 %v160_v35, %v159_v0  ;;  %v170_v51 = vadd.f32 %v169_v40, %v168_v29  ;;  %v187_v57 = vrot.slane %v186_v48, 2  ;;  %v209_v60 = vsel %vm154_vm1, %v150_v38, 0.0  ;;  %2360 = vmatprep.mubr.msk.bf16.mxu0 %vm154_vm1, %v3038_v53 }
  0x5f   :  { %v179_v62 = vadd.f32 %v178_v52, %v177_v41  ;;  %v194_v0 = vrot.slane %v193_v55, 4  ;;  %v202_v25 = vadd.f32 %v201_v59, %v200_v56  ;;  %v210_v29 = vsel %vm154_vm1, %v151_v39, 0.0 }
  0x60   :  { %v162_v44 = vrot.slane %v161_v47, 1  ;;  %v171_v61 = vrot.slane %v170_v51, 1  ;;  %v188_v28 = vadd.f32 %v187_v57, %v186_v48  ;;  %v218_v30 = vsel %vm154_vm1, %v152_v45, 0.0 }
  0x61   :  { %v180_v34 = vrot.slane %v179_v62, 1  ;;  %v195_v35 = vadd.f32 %v194_v0, %v193_v55  ;;  %v203_v36 = vrot.slane %v202_v25, 4  ;;  %v211_v40 = vadd.f32 %v210_v29, %v209_v60 }
  0x62   :  { %v163_v26 = vadd.f32 %v162_v44, %v161_v47  ;;  %v172_v31 = vadd.f32 %v171_v61, %v170_v51  ;;  %v189_v38 = vrot.slane %v188_v28, 1  ;;  %v219_v41 = vsel %vm154_vm1, %v153_v46, 0.0 }
  0x63   :  { %v181_v50 = vadd.f32 %v180_v34, %v179_v62  ;;  %v196_v52 = vrot.slane %v195_v35, 2  ;;  %v204_v56 = vadd.f32 %v203_v36, %v202_v25  ;;  %v212_v39 = vrot.slane %v211_v40, 4 }
  0x64   :  { %v228_v37 = vmul.f32 0.0625, %v163_v26  ;;  %v229_v49 = vmul.f32 0.0625, %v172_v31  ;;  %v190_v48 = vadd.f32 %v189_v38, %v188_v28  ;;  %v220_v44 = vadd.f32 %v219_v41, %v218_v30 }
  0x65   :  { %v230_v57 = vmul.f32 0.0625, %v181_v50  ;;  %v197_v51 = vadd.f32 %v196_v52, %v195_v35  ;;  %v205_v59 = vrot.slane %v204_v56, 2  ;;  %v213_v60 = vadd.f32 %v212_v39, %v211_v40  ;;  %2361 = vmatmul.mubr.msk.bf16.gmra.mxu0 %vm154_vm1, %v3043_v54 }
  0x66   :  { %v236_v47 = vpack.c.bf16 %v228_v37, %v228_v37  ;;  %v237_v45 = vpack.c.bf16 %v229_v49, %v229_v49  ;;  %v231_v61 = vmul.f32 0.0625, %v190_v48  ;;  %v221_v46 = vrot.slane %v220_v44, 4  ;;  %2364 = vmatprep.mubr.msk.bf16.mxu0 %vm154_vm1, %v3050_v58 }
  0x67   :  { %v238_v62 = vpack.c.bf16 %v230_v57, %v230_v57  ;;  %v198_v26 = vrot.slane %v197_v51, 1  ;;  %v206_v25 = vadd.f32 %v205_v59, %v204_v56  ;;  %v214_v31 = vrot.slane %v213_v60, 2 }
  0x68   :  { %v267_v55 = vunpack.c.l.b16 %v236_v47  ;;  %v268_v0 = vunpack.c.l.b16 %v237_v45  ;;  %v239_v29 = vpack.c.bf16 %v231_v61, %v231_v61  ;;  %v222_v28 = vadd.f32 %v221_v46, %v220_v44 }
  0x69   :  { %v269_v34 = vunpack.c.l.b16 %v238_v62  ;;  %v199_v30 = vadd.f32 %v198_v26, %v197_v51  ;;  %v207_v36 = vrot.slane %v206_v25, 1  ;;  %v215_v38 = vadd.f32 %v214_v31, %v213_v60 }
  0x6a   :  { %v276_v35 = vsel %vm275_vm2, %v268_v0, %v267_v55  ;;  %v270_v37 = vunpack.c.l.b16 %v239_v29  ;;  %v223_v41 = vrot.slane %v222_v28, 2 }
  0x6b   :  { %v208_v40 = vadd.f32 %v207_v36, %v206_v25  ;;  %v232_v49 = vmul.f32 0.0625, %v199_v30  ;;  %v278_v50 = vsel %vm277_vm3, %v269_v34, %v276_v35  ;;  %v216_v52 = vrot.slane %v215_v38, 1  ;;  %v2505_v34 = vld [vmem:[%s3592_s4 + $0x18] sm:$0xff]   ;;  %v2508_v36 = vld [vmem:[%s3592_s4 + $0x10] sm:$0xff]   ;;  %v2509_v35 = vld [vmem:[%s3592_s4 + $0x8] sm:$0xff]  }
  0x6c   :  { %v224_v56 = vadd.f32 %v223_v41, %v222_v28  ;;  %v280_v45 = vsel %vm279_vm4, %v270_v37, %v278_v50  ;;  %v2512_v37 = vld [vmem:[%s3592_s4] sm:$0xff]   ;;  %s3141_s4 = smov 0  }
  0x6d   :  { %v233_v47 = vmul.f32 0.0625, %v208_v40  ;;  %v240_v48 = vpack.c.bf16 %v232_v49, %v232_v49  ;;  %v217_v39 = vadd.f32 %v216_v52, %v215_v38  ;;  %2365 = vmatmul.mubr.msk.bf16.gmra.mxu0 %vm154_vm1, %v3058_v63  ;;  %v2237_v41 = vld [vmem:[#allocation8] ss:$0 sm:$0xff] }
  0x6e   :  { %v225_v44 = vrot.slane %v224_v56, 1 }
  0x6f   :  { %v241_v57 = vpack.c.bf16 %v233_v47, %v233_v47  ;;  %v271_v51 = vunpack.c.l.b16 %v240_v48  ;;  %v234_v55 = vmul.f32 0.0625, %v217_v39 }
  0x70   :  { %v226_v59 = vadd.f32 %v225_v44, %v224_v56 }
  0x71   :  { %v272_v61 = vunpack.c.l.b16 %v241_v57  ;;  %v282_v60 = vsel %vm281_vm5, %v271_v51, %v280_v45  ;;  %v242_v0 = vpack.c.bf16 %v234_v55, %v234_v55 }
  0x72   :  { %v235_v46 = vmul.f32 0.0625, %v226_v59 }
  0x73   :  { %v284_v62 = vsel %vm283_vm6, %v272_v61, %v282_v60  ;;  %v273_v25 = vunpack.c.l.b16 %v242_v0 }
  0x74   :  { %v243_v26 = vpack.c.bf16 %v235_v46, %v235_v46 }
  0x75   :  { %v286_v31 = vsel %vm285_vm7, %v273_v25, %v284_v62 }
  0x76   :  { %v274_v29 = vunpack.c.l.b16 %v243_v26 }
  0x78   :  { %v288_v28 = vsel %vm287_vm8, %v274_v29, %v286_v31 }
  0x79   :  { %v289_v30 = vpack.c.b16 %v288_v28, %v288_v28 }
  0x7b   :  { %2329 = vmatmul.mubr.msk.bf16.vlgmr.msra.gmra.mxu1 %vm154_vm1, %v289_v30 }
  0x7c   :  { %2333 = vmatpush3.bf16.msra.mxu1 %v2505_v34  ;;  %2340 = vmatprep.mubr.msk.bf16.mxu1 %vm2757_vm0, %v2756_v1 }
  0x7d   :  { %2334 = vmatprep.subr.bf16.mxu1 %v2756_v1 }
  0x80   :  { %2335 = vmatpush3.bf16.msra.mxu1 %v2508_v36 }
  0x81   :  { %2336 = vmatprep.subr.bf16.mxu1 %v2756_v1 }
  0x84   :  { %2337 = vmatpush3.bf16.msra.mxu1 %v2509_v35 }
  0x85   :  { %2338 = vmatprep.subr.bf16.mxu1 %v2756_v1 }
  0x88   :  { %2339 = vmatpush3.bf16.msra.mxu1 %v2512_v37 }
  0x8b   :  { %2341 = vmatmul.mubr.msk.bf16.vlgmr.msra.gmra.mxu1 %vm154_vm1, %v289_v30 }
 0x115   :  { %v2354_v38 = vpop.f32.mrf.mxu0 }
 0x116   :  { %v638_v49 = vadd.f32 %v2354_v38, %v2237_v41 }
 0x117   :  { %v566_v40 = vpop.f32.mrf.mxu0 }
 0x118   :  { %v636_v47 = vadd.f32 %v2237_v41, %v566_v40  ;;  %v2205_v40 = vld [vmem:[#allocation3] ss:$0 sm:$0xff] }
 0x119   :  { %v2355_v50 = vpop.f32.mrf.mxu0 }
 0x11a   :  { %v639_v52 = vadd.f32 %v2355_v50, %v2237_v41 }
 0x11b   :  { %v569_v56 = vpop.f32.mrf.mxu0 }
 0x11c   :  { %v3121_v48 = vpack.c.bf16 %v639_v52, %v638_v49  ;;  %v637_v39 = vadd.f32 %v2237_v41, %v569_v56 }
 0x11d   :  { %v2358_v44 = vpop.f32.mrf.mxu0 }
 0x11e   :  { %3644 = vst [vmem:[#allocation29_spill] sm:$0xff] %v3121_v48  ;;  %v3123_v45 = vpack.c.bf16 %v637_v39, %v636_v47  ;;  %v642_v51 = vadd.f32 %v2358_v44, %v2237_v41 }
 0x11f   :  { %v582_v57 = vpop.f32.mrf.mxu0 }
 0x120   :  { %3645 = vst [vmem:[#allocation30_spill] sm:$0xff] %v3123_v45  ;;  %v640_v61 = vadd.f32 %v2237_v41, %v582_v57 }
 0x121   :  { %v2359_v1 = vpop.f32.mrf.mxu0 }
 0x122   :  { %v643_v59 = vadd.f32 %v2359_v1, %v2237_v41 }
 0x123   :  { %v585_v55 = vpop.f32.mrf.mxu0 }
 0x124   :  { %v3125_v60 = vpack.c.bf16 %v643_v59, %v642_v51  ;;  %v641_v46 = vadd.f32 %v2237_v41, %v585_v55 }
 0x125   :  { %v2362_v0 = vpop.f32.mrf.mxu0 }
 0x126   :  { %3646 = vst [vmem:[#allocation31_spill] sm:$0xff] %v3125_v60  ;;  %v3127_v62 = vpack.c.bf16 %v641_v46, %v640_v61  ;;  %v646_v25 = vadd.f32 %v2362_v0, %v2237_v41  ;;  %v2211_v46 = vld [vmem:[#allocation6] ss:$0 sm:$0xff] }
 0x127   :  { %v598_v26 = vpop.f32.mrf.mxu0 }
 0x128   :  { %3647 = vst [vmem:[#allocation32_spill] sm:$0xff] %v3127_v62  ;;  %v644_v34 = vadd.f32 %v2237_v41, %v598_v26 }
 0x129   :  { %v2363_v29 = vpop.f32.mrf.mxu0 }
 0x12a   :  { %v647_v31 = vadd.f32 %v2363_v29, %v2237_v41 }
 0x12b   :  { %v601_v28 = vpop.f32.mrf.mxu0 }
 0x12c   :  { %v3129_v30 = vpack.c.bf16 %v647_v31, %v646_v25  ;;  %v645_v36 = vadd.f32 %v2237_v41, %v601_v28 }
 0x12d   :  { %v2366_v35 = vpop.f32.mrf.mxu0 }
 0x12e   :  { %3648 = vst [vmem:[#allocation33_spill] sm:$0xff] %v3129_v30  ;;  %v3131_v37 = vpack.c.bf16 %v645_v36, %v644_v34  ;;  %v650_v49 = vadd.f32 %v2366_v35, %v2237_v41 }
 0x12f   :  { %v614_v38 = vpop.f32.mrf.mxu0 }
 0x130   :  { %3649 = vst [vmem:[#allocation34_spill] sm:$0xff] %v3131_v37  ;;  %v648_v57 = vadd.f32 %v2237_v41, %v614_v38 }
 0x131   :  { %v2367_v50 = vpop.f32.mrf.mxu0 }
 0x132   :  { %v651_v56 = vadd.f32 %v2367_v50, %v2237_v41 }
 0x133   :  { %v617_v39 = vpop.f32.mrf.mxu0 }
 0x134   :  { %v3133_v51 = vpack.c.bf16 %v651_v56, %v650_v49  ;;  %v649_v1 = vadd.f32 %v2237_v41, %v617_v39 }
 0x136   :  { %3650 = vst [vmem:[#allocation35_spill] sm:$0xff] %v3133_v51  ;;  %v3135_v55 = vpack.c.bf16 %v649_v1, %v648_v57 }
 0x138   :  { %3651 = vst [vmem:[#allocation36_spill] sm:$0xff] %v3135_v55 }
 0x13b   :  { %v351_v52 = vpop.f32.mrf.mxu1 }
 0x13c   :  { %v352_v47 = vadd.f32 %v2205_v40, %v351_v52  }
 0x13d   :  { %v2330_v44 = vpop.f32.mrf.mxu1 }
 0x13f   :  { %v354_v59 = vpop.f32.mrf.mxu1 }
 0x141   :  { %v2331_v61 = vpop.f32.mrf.mxu1 }
 0x14b   :  { %v430_v0 = vpop.f32.mrf.mxu1 }
 0x14c   :  { %v431_v26 = vadd.f32 %v2211_v46, %v430_v0  }
 0x14d   :  { %v2342_v25 = vpop.f32.mrf.mxu1 }
 0x14f   :  { %v433_v29 = vpop.f32.mrf.mxu1 }
 0x151   :  { %v2343_v31 = vpop.f32.mrf.mxu1 }
 0x152 LB: > { %v3652_v62 = vld [vmem:[#allocation32_spill] sm:$0xff]  ;;  %v3653_v60 = vld [vmem:[#allocation31_spill] sm:$0xff]  ;;  %v3656_v48 = vld [vmem:[#allocation29_spill] sm:$0xff]  ;;  %3661 = vst [vmem:[#allocation37_spill] sm:$0xff] %v2739_v26  ;;  %v3607_v28 = vmov 0.0   ;;  %vm2759_vm9 = vmmov 0   ;;  %v3163_v36 = vpack.c.bf16 %v2743_v47, %v2743_v47  ;;  %v3609_v49 = vlaneseq  ;;  %s2747_s4 = sphi %s3141_s4, %s691_s4   ;;  %v2743_v47 = vphi %v352_v47, %v2165_v47   ;;  %v2739_v26 = vphi %v431_v26, %v2169_v26  }
 0x153   : > { %v3654_v55 = vld [vmem:[#allocation36_spill] sm:$0xff]  ;;  %v3655_v51 = vld [vmem:[#allocation35_spill] sm:$0xff]  ;;  %v3657_v45 = vld [vmem:[#allocation30_spill] sm:$0xff]  ;;  %2368 = vmatprep.subr.bf16.mxu0 %v3607_v28  ;;  %2372 = vmatprep.mubr.msk.bf16.mxu0 %vm2759_vm9, %v3607_v28  ;;  %vm713_vm10 = vcmask 261120   ;;  %v2760_v35 = vmov 0   ;;  %vm1017_vm11 = vcmask 130112  }
 0x154   : > { %v3658_v37 = vld [vmem:[#allocation34_spill] sm:$0xff]  ;;  %v3659_v30 = vld [vmem:[#allocation33_spill] sm:$0xff]  ;;  %v3662_v5 = vld [vmem:[#allocation20_spill] sm:$0xff]  ;;  %2376 = vmatprep.subr.bf16.mxu1 %v3607_v28  ;;  %2378 = vmatprep.mubr.msk.bf16.mxu1 %vm2759_vm9, %v3607_v28  ;;  %3667 = vst [vmem:[#allocation38_spill] sm:$0xff] %v3163_v36  ;;  %v2761_v38 = vmov 1966171168   ;;  %v757_v31 = vunpack.c.l.bf16 %v3657_v45 }
 0x155   : > { %v3660_v7 = vld [vmem:[#allocation22_spill] sm:$0xff]  ;;  %v3663_v4 = vld [vmem:[#allocation19_spill] sm:$0xff]  ;;  %v3665_v2 = vld [vmem:[#allocation17_spill] sm:$0xff]  ;;  %2521 = vset.pattern.permute.xlu0 %v2760_v35  ;;  %2522 = vset.pattern.permute.xlu1 %v2760_v35  ;;  %v776_v40 = vunpack.c.l.s4 %v2761_v38  ;;  %v3173_v52 = vshrl.u32 %v3609_v49, 7  ;;  %v759_v38 = vunpack.c.l.bf16 %v3656_v48  ;;  %vm1090_vm12 = vcmask 130048   ;;  %s2252_s22 = sshll.u32 %s2747_s4, 2 }
 0x156   : > { %v2240_v41 = vcombine.low %v3663_v4, %v3662_v5  ;;  %v3664_v3 = vld [vmem:[#allocation18_spill] sm:$0xff]  ;;  %v3666_v32 = vld [vmem:[#allocation27_spill] sm:$0xff]  ;;  %v3668_v42 = vld [vmem:[#allocation28_spill] sm:$0xff]  ;;  %s3680_s24 = sld [smem:[#allocation40_spill]]  ;;  %s2762_s25 = smov 32   ;;  %vm2161_vm13 = vcmask 257024  }
 0x157   : > { %v2239_v34 = vcombine.low %v3665_v2, %v3664_v3  ;;  %2377 = vmatpush3.bf16.msra.mxu1 %v3666_v32  ;;  %v777_v50 = vunpack.c.0.s8 %v776_v40  ;;  %v3669_v6 = vld [vmem:[#allocation21_spill] sm:$0xff]  ;;  %v3178_v59 = vsub.s32 0, %v3173_v52  ;;  %v760_v40 = vunpack.c.h.bf16 %v3656_v48  ;;  %v3670_v8 = vld [vmem:[#allocation23_spill] sm:$0xff]  ;;  %s2763_s5 = smov 64   ;;  %s2764_s26 = smov 96  }
 0x158   : > { %2369 = vmatpush3.bf16.msra.mxu0 %v2240_v41  ;;  %2382 = vmatprep.subr.bf16.mxu1 %v3607_v28  ;;  %v758_v41 = vunpack.c.h.bf16 %v3657_v45  ;;  %v765_v2 = vunpack.c.l.bf16 %v3658_v37  ;;  %s2160_s27 = scalar_lea.vmem [#allocation12], %s2252_s22  ;;  %s691_s4 = sadd.s32 1, %s2747_s4  }
 0x159   : > { %2370 = vmatprep.subr.bf16.mxu0 %v3607_v28  ;;  %v780_v56 = vsub.s32 %v777_v50, %v3173_v52  ;;  %p688_p11 = scmp.ge.s32.totalorder %s691_s4, 8  }
 0x15a   :  { %s2765_s28 = smov (%p688_p11), [#allocation12]  }
 0x15b   :  { %s2176_s6 = sshll.u32 (%p688_p11), %s2765_s28, 4  ;;  %s2177_s6 = int_to_ptr.vmem [resolvable:$true] %s2176_s6 }
 0x15c   : > { %2371 = vmatpush3.bf16.msra.mxu0 %v2239_v34  ;;  %s1901_s15 = scalar_lea.vmem %s3680_s24, %s2252_s22  ;;  %s2697_s0 = scalar_lea.vmem (%p688_p11), %s2177_s6, 512 }
 0x15d   : > { %2388 = vmatprep.subr.bf16.mxu0 %v3607_v28  ;;  %p2698_p12 = scmp.ne.s32.totalorder (%p688_p11), %s2177_s6, %s2697_s0  ;;  %p2702_p13 = scmp.lt.s32.totalorder (%p688_p11), %s2177_s6, %s2177_s6 }
 0x15e   :  { %p2703_p0 = scmp.lt.s32.totalorder (%p688_p11), %s2697_s0, %s2697_s0 }
 0x15f   : > { %2373 = vmatmul.mubr.msk.bf16.vlgmr.msra.gmra.mxu0 %vm713_vm10, %v3163_v36 }
 0x160   : > { %2389 = vmatpush3.bf16.msra.mxu0 %v3668_v42  ;;  %2390 = vmatprep.mubr.msk.bf16.mxu0 %vm2759_vm9, %v3607_v28  ;;  %p2704_p1 = por (%p688_p11), %p2703_p0, %p2702_p13 }
 0x161   : > { %2400 = vmatprep.subr.bf16.mxu0 %v3607_v28 }
 0x162   :  { %p2705_p2 = pnand (%p688_p11), %p2704_p1, %p2698_p12 }
 0x21f   : > { %v751_v47 = vpop.f32.mrf.mxu0 }
 0x220   : > { %v752_v39 = vadd.f32 %v3669_v6, %v751_v47  ;;  %v766_v6 = vunpack.c.h.bf16 %v3658_v37 }
 0x221   : > { %v2374_v44 = vpop.f32.mrf.mxu0 }
 0x222   : > { %v774_v57 = vcombine.high %v752_v39, %v752_v39  ;;  %v781_v1 = vrot.slane %v752_v39, %v780_v56  ;;  %v761_v39 = vunpack.c.l.bf16 %v3652_v62 }
 0x223   : > { %v754_v61 = vpop.f32.mrf.mxu0 }
 0x224   : > { %v788_v46 = vrot.slane %v774_v57, %v780_v56  ;;  %v789_v0 = vcombine.high %v781_v1, %v781_v1  ;;  %v797_v25 = vrot.slane %v781_v1, %v780_v56  ;;  %v762_v57 = vunpack.c.h.bf16 %v3652_v62 }
 0x225   : > { %v2375_v29 = vpop.f32.mrf.mxu0 }
 0x226   : > { %v811_v34 = vrot.slane %v789_v0, %v780_v56  ;;  %v819_v35 = vcombine.high %v797_v25, %v797_v25  ;;  %v804_v50 = vrot.slane %v788_v46, %v780_v56  ;;  %v826_v47 = vrot.slane %v797_v25, %v3178_v59 }
 0x227   : > { %v790_v28 = vcombine.high %v788_v46, %v788_v46 }
 0x228   : > { %v830_v44 = vrot.slane %v811_v34, %v3178_v59  ;;  %v863_v1 = vadd.f32 %v826_v47, %v757_v31  ;;  %v864_v61 = vadd.f32 %v826_v47, %v758_v41  ;;  %v834_v29 = vrot.slane %v819_v35, %v3178_v59 }
 0x229   : > { %v821_v3 = vcombine.high %v811_v34, %v811_v34  ;;  %v842_v25 = vrot.slane %v804_v50, %v3178_v59  ;;  %v763_v31 = vunpack.c.l.bf16 %v3653_v60  ;;  %v818_v41 = vrot.slane %v790_v28, %v780_v56 }
 0x22a   : > { %v865_v0 = vadd.f32 %v830_v44, %v759_v38  ;;  %v866_v49 = vadd.f32 %v830_v44, %v760_v40  ;;  %2523 = vtanh.f32 %v863_v1  ;;  %v867_v4 = vadd.f32 %v834_v29, %v761_v39 }
 0x22b   : > { %v868_v5 = vadd.f32 %v834_v29, %v762_v57  ;;  %v871_v46 = vadd.f32 %v842_v25, %v765_v2  ;;  %v838_v35 = vrot.slane %v821_v3, %v3178_v59  ;;  %v872_v38 = vadd.f32 %v842_v25, %v766_v6 }
 0x22c   : > { %2525 = vtanh.f32 %v865_v0  ;;  %v764_v34 = vunpack.c.h.bf16 %v3653_v60  ;;  %v820_v40 = vcombine.high %v804_v50, %v804_v50  ;;  %v767_v39 = vunpack.c.l.bf16 %v3659_v30 }
 0x22d   : > { %2527 = vtanh.f32 %v864_v61  ;;  %v869_v47 = vadd.f32 %v838_v35, %v763_v31  ;;  %v846_v44 = vrot.slane %v818_v41, %v3178_v59  ;;  %v768_v57 = vunpack.c.h.bf16 %v3659_v30 }
 0x22e   : > { %2529 = vtanh.f32 %v866_v49  ;;  %v870_v49 = vadd.f32 %v838_v35, %v764_v34  ;;  %v850_v2 = vrot.slane %v820_v40, %v3178_v59  ;;  %v770_v56 = vunpack.c.h.bf16 %v3654_v55 }
 0x22f   : > { %2531 = vtanh.f32 %v867_v4  ;;  %v769_v4 = vunpack.c.l.bf16 %v3654_v55  ;;  %v873_v3 = vadd.f32 %v846_v44, %v767_v39  ;;  %v874_v28 = vadd.f32 %v846_v44, %v768_v57 }
 0x230   : > { %2533 = vtanh.f32 %v868_v5  ;;  %v822_v5 = vcombine.high %v818_v41, %v818_v41  ;;  %v771_v25 = vunpack.c.l.bf16 %v3655_v51  ;;  %v772_v31 = vunpack.c.h.bf16 %v3655_v51 }
 0x231   : > { %2535 = vtanh.f32 %v871_v46  ;;  %v875_v0 = vadd.f32 %v850_v2, %v769_v4  ;;  %v876_v39 = vadd.f32 %v850_v2, %v770_v56 }
 0x232   : > { %2537 = vtanh.f32 %v872_v38  ;;  %v854_v38 = vrot.slane %v822_v5, %v3178_v59 }
 0x233   : > { %2539 = vtanh.f32 %v869_v47 }
 0x234   : > { %2541 = vtanh.f32 %v870_v49  ;;  %v877_v4 = vadd.f32 %v854_v38, %v771_v25 }
 0x235   : > { %2543 = vtanh.f32 %v873_v3 }
 0x236   : > { %2545 = vtanh.f32 %v874_v28 }
 0x237   : > { %v2524_v6 = vpop.eup %2523  ;;  %2547 = vtanh.f32 %v875_v0 }
 0x238   : > { %v901_v1 = vmul.f32 %v2524_v6, %v3660_v7  ;;  %2549 = vtanh.f32 %v876_v39 }
 0x239   : > { %v2526_v50 = vpop.eup %2525  ;;  %2551 = vtanh.f32 %v877_v4 }
 0x23a   : > { %v2528_v61 = vpop.eup %2527  ;;  %v903_v29 = vmul.f32 %v2526_v50, %v3660_v7  ;;  %v917_v35 = vsel %vm713_vm10, %v901_v1, 0.0  ;;  %v878_v50 = vadd.f32 %v854_v38, %v772_v31 }
 0x23b   : > { %v2530_v46 = vpop.eup %2529  ;;  %v902_v41 = vmul.f32 %v2528_v61, %v3660_v7  ;;  %918 = vadd.xlane.f32.xlu0 %v917_v35 }
 0x23c   : > { %v2532_v34 = vpop.eup %2531  ;;  %v923_v40 = vsel %vm713_vm10, %v903_v29, 0.0  ;;  %v904_v47 = vmul.f32 %v2530_v46, %v3660_v7  ;;  %2553 = vtanh.f32 %v878_v50 }
 0x23d   : > { %v2534_v44 = vpop.eup %2533  ;;  %924 = vadd.xlane.f32.xlu1 %v923_v40  ;;  %v920_v49 = vsel %vm713_vm10, %v902_v41, 0.0  ;;  %v905_v57 = vmul.f32 %v2532_v34, %v3660_v7 }
 0x23e   : > { %v2536_v6 = vpop.eup %2535  ;;  %v926_v3 = vsel %vm713_vm10, %v904_v47, 0.0  ;;  %v906_v5 = vmul.f32 %v2534_v44, %v3660_v7 }
 0x23f   : > { %921 = vadd.xlane.f32.xlu0 %v920_v49  ;;  %v2538_v1 = vpop.eup %2537  ;;  %v929_v2 = vsel %vm713_vm10, %v905_v57, 0.0  ;;  %v909_v28 = vmul.f32 %v2536_v6, %v3660_v7 }
 0x240   : > { %v2540_v56 = vpop.eup %2539  ;;  %v932_v61 = vsel %vm713_vm10, %v906_v5, 0.0  ;;  %v910_v29 = vmul.f32 %v2538_v1, %v3660_v7 }
 0x241   : > { %927 = vadd.xlane.f32.xlu1 %v926_v3  ;;  %v2542_v0 = vpop.eup %2541  ;;  %v941_v25 = vsel %vm713_vm10, %v909_v28, 0.0  ;;  %v907_v31 = vmul.f32 %v2540_v56, %v3660_v7 }
 0x242   : > { %v2544_v46 = vpop.eup %2543  ;;  %v944_v35 = vsel %vm713_vm10, %v910_v29, 0.0  ;;  %v908_v41 = vmul.f32 %v2542_v0, %v3660_v7 }
 0x243   : > { %930 = vadd.xlane.f32.xlu0 %v929_v2  ;;  %v2546_v38 = vpop.eup %2545  ;;  %v935_v34 = vsel %vm713_vm10, %v907_v31, 0.0  ;;  %v911_v40 = vmul.f32 %v2544_v46, %v3660_v7 }
 0x244   : > { %v2548_v47 = vpop.eup %2547  ;;  %v938_v39 = vsel %vm713_vm10, %v908_v41, 0.0  ;;  %v912_v44 = vmul.f32 %v2546_v38, %v3660_v7 }
 0x245   : > { %933 = vadd.xlane.f32.xlu1 %v932_v61  ;;  %v2550_v49 = vpop.eup %2549  ;;  %v947_v57 = vsel %vm713_vm10, %v911_v40, 0.0  ;;  %v913_v4 = vmul.f32 %v2548_v47, %v3660_v7 }
 0x246   : > { %v2552_v6 = vpop.eup %2551  ;;  %v950_v3 = vsel %vm713_vm10, %v912_v44, 0.0  ;;  %v914_v5 = vmul.f32 %v2550_v49, %v3660_v7  ;;  %v3671_v49 = vlaneseq }
 0x247   : > { %942 = vadd.xlane.f32.xlu0 %v941_v25  ;;  %v953_v1 = vsel %vm713_vm10, %v913_v4, 0.0  ;;  %v915_v2 = vmul.f32 %v2552_v6, %v3660_v7 }
 0x248   : > { %v956_v28 = vsel %vm713_vm10, %v914_v5, 0.0 }
 0x249   : > { %945 = vadd.xlane.f32.xlu1 %v944_v35  ;;  %v2554_v50 = vpop.eup %2553  ;;  %v959_v61 = vsel %vm713_vm10, %v915_v2, 0.0 }
 0x24a   : > { %v916_v56 = vmul.f32 %v2554_v50, %v3660_v7 }
 0x24b   : > { %936 = vadd.xlane.f32.xlu0 %v935_v34 }
 0x24c   : > { %v962_v29 = vsel %vm713_vm10, %v916_v56, 0.0 }
 0x24d   : > { %939 = vadd.xlane.f32.xlu1 %v938_v39 }
 0x24f   : > { %948 = vadd.xlane.f32.xlu0 %v947_v57  ;;  %v1007_v57 = vand.u32 127, %v3671_v49 }
 0x251   : > { %951 = vadd.xlane.f32.xlu1 %v950_v3  ;;  %v1012_v6 = vadd.s32 4294967288, %v1007_v57  ;;  %v3239_v50 = vsub.s32 %v1007_v57, %v3173_v52 }
 0x253   : > { %954 = vadd.xlane.f32.xlu0 %v953_v1  ;;  %v3242_v1 = vsub.s32 %v1012_v6, %v3173_v52 }
 0x255   : > { %957 = vadd.xlane.f32.xlu1 %v956_v28 }
 0x257   : > { %960 = vadd.xlane.f32.xlu0 %v959_v61 }
 0x259   : > { %963 = vadd.xlane.f32.xlu1 %v962_v29 }
 0x26d   : > { %971 = vperm.xlu0 %2521, %v3670_v8  }
 0x2c4   : > { %v919_v0 = vpop.xlane.xlu0 %918 }
 0x2c6   : > { %v925_v25 = vpop.xlane.xlu1 %924 }
 0x2c8   : > { %v922_v31 = vpop.xlane.xlu0 %921 }
 0x2ca   : > { %v928_v46 = vpop.xlane.xlu1 %927 }
 0x2cc   : > { %v931_v35 = vpop.xlane.xlu0 %930 }
 0x2ce   : > { %v934_v41 = vpop.xlane.xlu1 %933 }
 0x2d0   : > { %v943_v38 = vpop.xlane.xlu0 %942 }
 0x2d2   : > { %v946_v40 = vpop.xlane.xlu1 %945 }
 0x2d4   : > { %v937_v34 = vpop.xlane.xlu0 %936 }
 0x2d6   : > { %v940_v39 = vpop.xlane.xlu1 %939 }
 0x2d8   : > { %v949_v47 = vpop.xlane.xlu0 %948 }
 0x2da   : > { %v952_v4 = vpop.xlane.xlu1 %951 }
 0x2dc   : > { %v955_v44 = vpop.xlane.xlu0 %954 }
 0x2de   : > { %v958_v5 = vpop.xlane.xlu1 %957 }
 0x2e0   : > { %v961_v3 = vpop.xlane.xlu0 %960 }
 0x2e8   : > { %v972_v2 = vpop.permute.xlu0 %971 }
 0x2e9   : > { %v974_v28 = vadd.f32 %v972_v2, %v919_v0  ;;  %v3244_v56 = vadd.f32 %v972_v2, %v922_v31  ;;  %v3246_v61 = vadd.f32 %v972_v2, %v925_v25  ;;  %v3248_v29 = vadd.f32 %v972_v2, %v928_v46 }
 0x2ea   : > { %v3250_v7 = vadd.f32 %v972_v2, %v931_v35  ;;  %v3252_v49 = vadd.f32 %v972_v2, %v934_v41  ;;  %v3254_v8 = vadd.f32 %v972_v2, %v937_v34  ;;  %v3256_v57 = vadd.f32 %v972_v2, %v940_v39  ;;  %v964_v35 = vpop.xlane.xlu1 %963 }
 0x2eb   : > { %v3258_v30 = vadd.f32 %v972_v2, %v943_v38  ;;  %v3260_v6 = vadd.f32 %v972_v2, %v946_v40  ;;  %v3262_v0 = vadd.f32 %v972_v2, %v949_v47  ;;  %v3264_v31 = vadd.f32 %v972_v2, %v952_v4 }
 0x2ec   : > { %v3266_v25 = vadd.f32 %v972_v2, %v955_v44  ;;  %v3268_v46 = vadd.f32 %v972_v2, %v958_v5  ;;  %v1011_v41 = vrot.slane %v974_v28, %v3239_v50  ;;  %v1016_v34 = vrot.slane %v3244_v56, %v3242_v1 }
 0x2ed   : > { %v1022_v38 = vrot.slane %v3246_v61, %v3239_v50  ;;  %v1026_v40 = vrot.slane %v3248_v29, %v3242_v1  ;;  %v3277_v47 = vadd.f32 %v972_v2, %v961_v3  ;;  %v3279_v39 = vadd.f32 %v972_v2, %v964_v35 }
 0x2ee   : > { %v1031_v44 = vrot.slane %v3250_v7, %v3239_v50  ;;  %v1035_v4 = vrot.slane %v3252_v49, %v3242_v1  ;;  %v1018_v5 = vsel %vm1017_vm11, %v1016_v34, %v1011_v41  ;;  %v1040_v37 = vrot.slane %v3254_v8, %v3239_v50 }
 0x2ef   : > { %v1027_v32 = vsel %vm1017_vm11, %v1026_v40, %v1022_v38  ;;  %v1044_v42 = vrot.slane %v3256_v57, %v3242_v1  ;;  %v1049_v2 = vrot.slane %v3258_v30, %v3239_v50  ;;  %v1053_v35 = vrot.slane %v3260_v6, %v3242_v1 }
 0x2f0   : > { %v1036_v3 = vsel %vm1017_vm11, %v1035_v4, %v1031_v44  ;;  %v1058_v45 = vrot.slane %v3262_v0, %v3239_v50  ;;  %v1062_v41 = vrot.slane %v3264_v31, %v3242_v1  ;;  %v1067_v34 = vrot.slane %v3266_v25, %v3239_v50 }
 0x2f1   : > { %v1071_v38 = vrot.slane %v3268_v46, %v3242_v1  ;;  %v1082_v40 = vsel %vm275_vm2, %v1027_v32, %v1018_v5  ;;  %v1045_v44 = vsel %vm1017_vm11, %v1044_v42, %v1040_v37  ;;  %v1076_v4 = vrot.slane %v3277_v47, %v3239_v50 }
 0x2f2   : > { %v1080_v48 = vrot.slane %v3279_v39, %v3242_v1  ;;  %v1083_v51 = vsel %vm277_vm3, %v1036_v3, %v1082_v40  ;;  %v1054_v55 = vsel %vm1017_vm11, %v1053_v35, %v1049_v2  ;;  %v1063_v62 = vsel %vm1017_vm11, %v1062_v41, %v1058_v45 }
 0x2f3   : > { %v1084_v60 = vsel %vm279_vm4, %v1045_v44, %v1083_v51  ;;  %v1072_v32 = vsel %vm1017_vm11, %v1071_v38, %v1067_v34  ;;  %v3624_v51 = vsub.s32 3, %v3173_v52  ;;  %v3626_v45 = vsub.s32 1, %v3173_v52 }
 0x2f4   : > { %v1085_v27 = vsel %vm281_vm5, %v1054_v55, %v1084_v60  ;;  %v1081_v37 = vsel %vm1017_vm11, %v1080_v48, %v1076_v4  ;;  %v3623_v41 = vsub.s32 5, %v3173_v52  ;;  %v3622_v4 = vsub.s32 6, %v3173_v52 }
 0x2f5   : > { %v1086_v42 = vsel %vm283_vm6, %v1063_v62, %v1085_v27  ;;  %v3628_v27 = vsub.s32 4, %v3173_v52 }
 0x2f6   : > { %v1087_v5 = vsel %vm285_vm7, %v1072_v32, %v1086_v42 }
 0x2f7   : > { %v1088_v36 = vsel %vm287_vm8, %v1081_v37, %v1087_v5 }
 0x2f8   : > { %v1091_v3 = vsel %vm1090_vm12, %v1088_v36, -inf }
 0x2f9   : > { %1092 = vmax.xlane.f32.xlu1 %v1091_v3  ;;  %v3627_v3 = vsub.s32 7, %v3173_v52 }
 0x382   : > { %v1093_v2 = vpop.xlane.xlu1 %1092 }
 0x383   : > { %v1098_v60 = vrot.slane %v1093_v2, %v3178_v59  ;;  %v1110_v48 = vrot.slane %v1093_v2, %v3624_v51  ;;  %v1102_v62 = vrot.slane %v1093_v2, %v3626_v45  ;;  %v1114_v34 = vrot.slane %v1093_v2, %v3628_v27 }
 0x384   : > { %v1118_v32 = vrot.slane %v1093_v2, %v3623_v41 }
 0x385   : > { %v1135_v55 = vsub.f32 %v974_v28, %v1098_v60  ;;  %v1136_v35 = vsub.f32 %v3244_v56, %v1098_v60  ;;  %v1142_v38 = vsub.f32 %v3256_v57, %v1110_v48  ;;  %v3625_v28 = vsub.s32 2, %v3173_v52 }
 0x386   : > { %v1137_v40 = vsub.f32 %v3246_v61, %v1102_v62  ;;  %v1144_v56 = vsub.f32 %v3260_v6, %v1114_v34  ;;  %v1138_v5 = vsub.f32 %v3248_v29, %v1102_v62  ;;  %v1122_v61 = vrot.slane %v1093_v2, %v3622_v4 }
 0x387   : > { %v1151_v36 = vmul.f32 1.442695, %v1135_v55  ;;  %v1153_v44 = vmul.f32 1.442695, %v1136_v35  ;;  %v1165_v42 = vmul.f32 1.442695, %v1142_v38  ;;  %v1106_v37 = vrot.slane %v1093_v2, %v3625_v28 }
 0x388   : > { %v1155_v57 = vmul.f32 1.442695, %v1137_v40  ;;  %v1146_v60 = vsub.f32 %v3264_v31, %v1118_v32  ;;  %v1169_v55 = vmul.f32 1.442695, %v1144_v56  ;;  %v1157_v6 = vmul.f32 1.442695, %v1138_v5 }
 0x389   : > { %2555 = vpow2.f32 %v1151_v36  ;;  %v1139_v35 = vsub.f32 %v3250_v7, %v1106_v37  ;;  %v1126_v36 = vrot.slane %v1093_v2, %v3627_v3  ;;  %v1148_v29 = vsub.f32 %v3268_v46, %v1122_v61 }
 0x38a   : > { %2557 = vpow2.f32 %v1153_v44  ;;  %v1173_v62 = vmul.f32 1.442695, %v1146_v60  ;;  %v1140_v38 = vsub.f32 %v3252_v49, %v1106_v37  ;;  %v1141_v56 = vsub.f32 %v3254_v8, %v1110_v48 }
 0x38b   : > { %2559 = vpow2.f32 %v1165_v42  ;;  %v1159_v40 = vmul.f32 1.442695, %v1139_v35  ;;  %v1150_v31 = vsub.f32 %v3279_v39, %v1126_v36  ;;  %v1177_v7 = vmul.f32 1.442695, %v1148_v29 }
 0x38c   : > { %2561 = vpow2.f32 %v1155_v57  ;;  %v1161_v2 = vmul.f32 1.442695, %v1140_v38  ;;  %v1143_v37 = vsub.f32 %v3258_v30, %v1114_v34  ;;  %v1163_v5 = vmul.f32 1.442695, %v1141_v56 }
 0x38d   : > { %2563 = vpow2.f32 %v1169_v55  ;;  %v1181_v49 = vmul.f32 1.442695, %v1150_v31  ;;  %v1145_v39 = vsub.f32 %v3262_v0, %v1118_v32  ;;  %v1147_v34 = vsub.f32 %v3266_v25, %v1122_v61 }
 0x38e   : > { %2565 = vpow2.f32 %v1157_v6  ;;  %v1167_v48 = vmul.f32 1.442695, %v1143_v37  ;;  %v1149_v32 = vsub.f32 %v3277_v47, %v1126_v36 }
 0x38f   : > { %2567 = vpow2.f32 %v1173_v62  ;;  %v1171_v55 = vmul.f32 1.442695, %v1145_v39  ;;  %v1175_v6 = vmul.f32 1.442695, %v1147_v34 }
 0x390   : > { %2569 = vpow2.f32 %v1159_v40  ;;  %v1179_v61 = vmul.f32 1.442695, %v1149_v32 }
 0x391   : > { %2571 = vpow2.f32 %v1177_v7 }
 0x392   : > { %2573 = vpow2.f32 %v1161_v2 }
 0x393   : > { %2575 = vpow2.f32 %v1181_v49 }
 0x394   : > { %2577 = vpow2.f32 %v1163_v5 }
 0x395   : > { %2579 = vpow2.f32 %v1167_v48 }
 0x396   : > { %v3352_v44 = vpop.eup %2555  ;;  %2581 = vpow2.f32 %v1171_v55 }
 0x397   : > { %1200 = vperm.xlu1 %2522, %v3352_v44   ;;  %v3357_v42 = vpop.eup %2557  ;;  %2583 = vpow2.f32 %v1175_v6 }
 0x398   : > { %v3360_v46 = vpop.eup %2559  ;;  %2585 = vpow2.f32 %v1179_v61 }
 0x399   : > { %v3363_v57 = vpop.eup %2561  ;;  %1221 = vperm.xlu0 %2521, %v3360_v46  }
 0x39a   : > { %v3367_v8 = vpop.eup %2563 }
 0x39b   : > { %1203 = vperm.xlu1 %2522, %v3357_v42   ;;  %v3370_v60 = vpop.eup %2565 }
 0x39c   : > { %v3374_v30 = vpop.eup %2567 }
 0x39d   : > { %1227 = vperm.xlu0 %2521, %v3367_v8   ;;  %v3377_v35 = vpop.eup %2569 }
 0x39e   : > { %v3381_v0 = vpop.eup %2571 }
 0x39f   : > { %1206 = vperm.xlu1 %2522, %v3363_v57   ;;  %v3384_v29 = vpop.eup %2573 }
 0x3a0   : > { %v3388_v25 = vpop.eup %2575 }
 0x3a1   : > { %1233 = vperm.xlu0 %2521, %v3374_v30   ;;  %v3390_v62 = vpop.eup %2577 }
 0x3a2   : > { %v3394_v47 = vpop.eup %2579 }
 0x3a3   : > { %1209 = vperm.xlu1 %2522, %v3370_v60   ;;  %v3397_v36 = vpop.eup %2581 }
 0x3a4   : > { %v3400_v38 = vpop.eup %2583 }
 0x3a5   : > { %1239 = vperm.xlu0 %2521, %v3381_v0   ;;  %v2586_v40 = vpop.eup %2585 }
 0x3a7   : > { %1212 = vperm.xlu1 %2522, %v3377_v35  }
 0x3a9   : > { %1245 = vperm.xlu0 %2521, %v3388_v25  }
 0x3ab   : > { %1215 = vperm.xlu1 %2522, %v3384_v29  }
 0x3af   : > { %1218 = vperm.xlu1 %2522, %v3390_v62  }
 0x3b3   : > { %1224 = vperm.xlu1 %2522, %v3394_v47  }
 0x3b7   : > { %1230 = vperm.xlu1 %2522, %v3397_v36  }
 0x3bb   : > { %1236 = vperm.xlu1 %2522, %v3400_v38  }
 0x3bf   : > { %1242 = vperm.xlu1 %2522, %v2586_v40  }
 0x412   : > { %v1201_v31 = vpop.permute.xlu1 %1200 }
 0x413   : > { %v1250_v26 = vrot.slane %v1201_v31, %v3239_v50 }
 0x414   : > { %v1222_v49 = vpop.permute.xlu0 %1221 }
 0x415   : > { %v1281_v27 = vrot.slane %v1222_v49, %v3242_v1 }
 0x416   : > { %v1204_v7 = vpop.permute.xlu1 %1203 }
 0x417   : > { %v1254_v41 = vrot.slane %v1204_v7, %v3242_v1 }
 0x418   : > { %v1228_v5 = vpop.permute.xlu0 %1227 }
 0x41a   : > { %v1207_v56 = vpop.permute.xlu1 %1206 }
 0x41b   : > { %v1259_v51 = vrot.slane %v1207_v56, %v3239_v50  ;;  %v1255_v56 = vsel %vm1017_vm11, %v1254_v41, %v1250_v26 }
 0x41c   : > { %v1234_v34 = vpop.permute.xlu0 %1233 }
 0x41e   : > { %v1210_v2 = vpop.permute.xlu1 %1209 }
 0x41f   : > { %v1263_v32 = vrot.slane %v1210_v2, %v3242_v1 }
 0x420   : > { %v1240_v6 = vpop.permute.xlu0 %1239 }
 0x421   : > { %v1264_v2 = vsel %vm1017_vm11, %v1263_v32, %v1259_v51  ;;  %v1308_v49 = vrot.slane %v1240_v6, %v3242_v1 }
 0x422   : > { %v1213_v37 = vpop.permute.xlu1 %1212  ;;  %v1319_v31 = vsel %vm275_vm2, %v1264_v2, %v1255_v56 }
 0x423   : > { %v1268_v45 = vrot.slane %v1213_v37, %v3239_v50 }
 0x424   : > { %v1246_v51 = vpop.permute.xlu0 %1245 }
 0x426   : > { %v1216_v39 = vpop.permute.xlu1 %1215 }
 0x427   : > { %v1272_v61 = vrot.slane %v1216_v39, %v3242_v1  ;;  %v1290_v39 = vrot.slane %v1228_v5, %v3242_v1 }
 0x429   : > { %v1273_v7 = vsel %vm1017_vm11, %v1272_v61, %v1268_v45 }
 0x42a   : > { %v1219_v48 = vpop.permute.xlu1 %1218  ;;  %v1320_v5 = vsel %vm277_vm3, %v1273_v7, %v1319_v31  ;;  %v3672_v7 = vsub.s32 4, %v3173_v52 }
 0x42b   : > { %v1277_v28 = vrot.slane %v1219_v48, %v3239_v50  ;;  %v1299_v48 = vrot.slane %v1234_v34, %v3242_v1 }
 0x42d   : > { %v1282_v37 = vsel %vm1017_vm11, %v1281_v27, %v1277_v28  ;;  %v1317_v27 = vrot.slane %v1246_v51, %v3242_v1 }
 0x42e   : > { %v1225_v55 = vpop.permute.xlu1 %1224  ;;  %v1321_v41 = vsel %vm279_vm4, %v1282_v37, %v1320_v5  ;;  %v3673_v37 = vsub.s32 7, %v3173_v52 }
 0x42f   : > { %v1286_v3 = vrot.slane %v1225_v55, %v3239_v50 }
 0x432   : > { %v1231_v4 = vpop.permute.xlu1 %1230 }
 0x433   : > { %v1295_v13 = vrot.slane %v1231_v4, %v3239_v50  ;;  %v1291_v4 = vsel %vm1017_vm11, %v1290_v39, %v1286_v3 }
 0x434   : > { %v1322_v28 = vsel %vm281_vm5, %v1291_v4, %v1321_v41 }
 0x435   : > { %v1300_v45 = vsel %vm1017_vm11, %v1299_v48, %v1295_v13 }
 0x436   : > { %v1237_v14 = vpop.permute.xlu1 %1236  ;;  %v1323_v34 = vsel %vm283_vm6, %v1300_v45, %v1322_v28 }
 0x437   : > { %v1304_v55 = vrot.slane %v1237_v14, %v3239_v50 }
 0x439   : > { %v1309_v26 = vsel %vm1017_vm11, %v1308_v49, %v1304_v55  ;;  %v3674_v49 = vsub.s32 1, %v3173_v52 }
 0x43a   : > { %v1243_v32 = vpop.permute.xlu1 %1242  ;;  %v1324_v3 = vsel %vm285_vm7, %v1309_v26, %v1323_v34 }
 0x43b   : > { %v1313_v14 = vrot.slane %v1243_v32, %v3239_v50 }
 0x43d   : > { %v1318_v6 = vsel %vm1017_vm11, %v1317_v27, %v1313_v14 }
 0x43e   : > { %v1325_v61 = vsel %vm287_vm8, %v1318_v6, %v1324_v3 }
 0x43f   : > { %v1327_v13 = vsel %vm1090_vm12, %v1325_v61, 0.0 }
 0x440   : > { %1328 = vadd.xlane.f32.xlu1 %v1327_v13 }
 0x4c9   : > { %v1329_v2 = vpop.xlane.xlu1 %1328 }
 0x4ca   : > { %2587 = vrcp.f32 %v1329_v2 }
 0x4d7   : > { %v2588_v39 = vpop.eup %2587 }
 0x4d8   : > { %v1351_v56 = vrot.slane %v2588_v39, %v3672_v7  ;;  %v1335_v48 = vrot.slane %v2588_v39, %v3178_v59  ;;  %v1363_v55 = vrot.slane %v2588_v39, %v3673_v37  ;;  %v1339_v31 = vrot.slane %v2588_v39, %v3674_v49 }
 0x4da   : > { %v1380_v51 = vmul.f32 %v3394_v47, %v1351_v56  ;;  %v1381_v4 = vmul.f32 %v3367_v8, %v1351_v56  ;;  %v1372_v5 = vmul.f32 %v3352_v44, %v1335_v48  ;;  %v1373_v45 = vmul.f32 %v3357_v42, %v1335_v48 }
 0x4db   : > { %v1386_v32 = vmul.f32 %v2586_v40, %v1363_v55  ;;  %v1387_v26 = vmul.f32 %v3388_v25, %v1363_v55  ;;  %v1374_v14 = vmul.f32 %v3363_v57, %v1339_v31  ;;  %v1375_v3 = vmul.f32 %v3370_v60, %v1339_v31 }
 0x4dc   : > { %v1392_v41 = vpack.c.bf16 %v1381_v4, %v1380_v51  ;;  %v1388_v27 = vpack.c.bf16 %v1373_v45, %v1372_v5  ;;  %v3675_v44 = vsub.s32 2, %v3173_v52  ;;  %v3676_v60 = vsub.s32 3, %v3173_v52 }
 0x4dd   : > { %v1395_v6 = vpack.c.bf16 %v1387_v26, %v1386_v32  ;;  %v1389_v61 = vpack.c.bf16 %v1375_v3, %v1374_v14 }
 0x4de   : > { %v1650_v28 = vunpack.c.h.b16 %v1392_v41  ;;  %v1397_v34 = vunpack.c.l.b16 %v1388_v27  ;;  %v1398_v8 = vunpack.c.h.b16 %v1388_v27  ;;  %v1343_v42 = vrot.slane %v2588_v39, %v3675_v44 }
 0x4df   : > { %v1838_v47 = vunpack.c.l.b16 %v1395_v6  ;;  %v1460_v25 = vunpack.c.l.b16 %v1389_v61  ;;  %v1461_v13 = vunpack.c.h.b16 %v1389_v61  ;;  %v1347_v7 = vrot.slane %v2588_v39, %v3676_v60 }
 0x4e0   : > { %1655 = vperm.xlu1 %2522, %v1650_v28   ;;  %1400 = vperm.xlu0 %2521, %v1397_v34   ;;  %v1376_v40 = vmul.f32 %v3377_v35, %v1343_v42  ;;  %v1377_v57 = vmul.f32 %v3384_v29, %v1343_v42  ;;  %v3677_v35 = vsub.s32 5, %v3173_v52  ;;  %v1649_v45 = vunpack.c.l.b16 %v1392_v41 }
 0x4e1   : > { %v1378_v48 = vmul.f32 %v3390_v62, %v1347_v7  ;;  %v1379_v37 = vmul.f32 %v3360_v46, %v1347_v7  ;;  %v3678_v62 = vsub.s32 6, %v3173_v52  ;;  %v3679_v61 = vmov 0.0  }
 0x4e2   : > { %v1390_v2 = vpack.c.bf16 %v1377_v57, %v1376_v40  ;;  %v1355_v29 = vrot.slane %v2588_v39, %v3677_v35 }
 0x4e3   : > { %v1391_v49 = vpack.c.bf16 %v1379_v37, %v1378_v48  ;;  %v1359_v46 = vrot.slane %v2588_v39, %v3678_v62 }
 0x4e4   : > { %1841 = vperm.xlu1 %2522, %v1838_v47   ;;  %1403 = vperm.xlu0 %2521, %v1398_v8   ;;  %v1523_v56 = vunpack.c.l.b16 %v1390_v2  ;;  %v1524_v55 = vunpack.c.h.b16 %v1390_v2  ;;  %v1382_v4 = vmul.f32 %v3397_v36, %v1355_v29  ;;  %v1383_v5 = vmul.f32 %v3374_v30, %v1355_v29 }
 0x4e5   : > { %v1586_v31 = vunpack.c.l.b16 %v1391_v49  ;;  %v1587_v51 = vunpack.c.h.b16 %v1391_v49  ;;  %v1384_v27 = vmul.f32 %v3400_v38, %v1359_v46  ;;  %v1385_v14 = vmul.f32 %v3381_v0, %v1359_v46 }
 0x4e6   : > { %v1393_v32 = vpack.c.bf16 %v1383_v5, %v1382_v4  ;;  %v1839_v30 = vunpack.c.h.b16 %v1395_v6 }
 0x4e7   : > { %v1394_v34 = vpack.c.bf16 %v1385_v14, %v1384_v27 }
 0x4e8   : > { %1463 = vperm.xlu0 %2521, %v1460_v25   ;;  %v1712_v26 = vunpack.c.l.b16 %v1393_v32  ;;  %v1713_v28 = vunpack.c.h.b16 %v1393_v32 }
 0x4e9   : > { %v1775_v3 = vunpack.c.l.b16 %v1394_v34  ;;  %v1776_v36 = vunpack.c.h.b16 %v1394_v34 }
 0x4ec   : > { %1466 = vperm.xlu0 %2521, %v1461_v13  }
 0x4f0   : > { %1526 = vperm.xlu0 %2521, %v1523_v56  }
 0x4f4   : > { %1529 = vperm.xlu0 %2521, %v1524_v55  }
 0x4f8   : > { %1589 = vperm.xlu0 %2521, %v1586_v31  }
 0x4fc   : > { %1592 = vperm.xlu0 %2521, %v1587_v51  }
 0x500   : > { %1652 = vperm.xlu0 %2521, %v1649_v45  }
 0x504   : > { %1715 = vperm.xlu0 %2521, %v1712_v26  }
 0x508   : > { %1718 = vperm.xlu0 %2521, %v1713_v28  }
 0x50c   : > { %1778 = vperm.xlu0 %2521, %v1775_v3  }
 0x510   : > { %1781 = vperm.xlu0 %2521, %v1776_v36  }
 0x514   : > { %1844 = vperm.xlu0 %2521, %v1839_v30  }
 0x55b   : > { %v1401_v41 = vpop.permute.xlu0 %1400  ;;  %v1656_v31 = vpop.permute.xlu1 %1655 }
 0x55c   : > { %v1408_v52 = vrot.slane %v1401_v41, %v3239_v50  ;;  %v1664_v4 = vrot.slane %v1656_v31, %v3242_v1 }
 0x55f   : > { %v1404_v47 = vpop.permute.xlu0 %1403  ;;  %v1842_v41 = vpop.permute.xlu1 %1841 }
 0x560   : > { %v1412_v39 = vrot.slane %v1404_v47, %v3242_v1 }
 0x562   : > { %v1413_v38 = vsel %vm1017_vm11, %v1412_v39, %v1408_v52 }
 0x563   : > { %v1414_v8 = vpack.c.b16 %v1413_v38, %v1413_v38  ;;  %v1464_v0 = vpop.permute.xlu0 %1463  ;;  %v1849_v38 = vrot.slane %v1842_v41, %v3239_v50 }
 0x564   : > { %v1471_v6 = vrot.slane %v1464_v0, %v3239_v50 }
 0x565   : > { %2379 = vmatmul.mubr.msk.bf16.vlgmr.msra.gmra.mxu1 %vm1090_vm12, %v1414_v8 }
 0x566   : > { %2383 = vmatpush3.bf16.msra.mxu1 %v2999_v33  ;;  %2384 = vmatprep.mubr.msk.bf16.mxu1 %vm2759_vm9, %v3679_v61 }
 0x567   : > { %v1467_v44 = vpop.permute.xlu0 %1466  ;;  %2394 = vmatprep.subr.bf16.mxu1 %v3679_v61 }
 0x568   : > { %v1475_v42 = vrot.slane %v1467_v44, %v3242_v1 }
 0x56a   : > { %v1476_v25 = vsel %vm1017_vm11, %v1475_v42, %v1471_v6  ;;  %v2258_v6 = vcombine.low %v2915_v9, %v2917_v10  ;;  %v2255_v42 = vcombine.low %v2946_v17, %v2951_v18 }
 0x56b   : > { %v1477_v40 = vpack.c.b16 %v1476_v25, %v1476_v25  ;;  %v1527_v57 = vpop.permute.xlu0 %1526  ;;  %v2262_v25 = vcombine.low %v2967_v23, %v2969_v24 }
 0x56c   : > { %v1534_v2 = vrot.slane %v1527_v57, %v3239_v50  ;;  %v2254_v57 = vcombine.low %v2936_v15, %v2941_v16 }
 0x56d   : > { %2385 = vmatmul.mubr.msk.bf16.vlgmr.msra.gmra.mxu1 %vm1090_vm12, %v1477_v40  ;;  %v1902_v40 = vld [vmem:[%s1901_s15] sm:$0xf] }
 0x56e   : > { %2395 = vmatpush3.bf16.msra.mxu1 %v3021_v43  ;;  %2396 = vmatprep.mubr.msk.bf16.mxu1 %vm2759_vm9, %v3679_v61 }
 0x56f   : > { %v1530_v13 = vpop.permute.xlu0 %1529  ;;  %2406 = vmatprep.subr.bf16.mxu1 %v3679_v61 }
 0x570   : > { %v1538_v60 = vrot.slane %v1530_v13, %v3242_v1  ;;  %v2261_v13 = vcombine.low %v2963_v21, %v2965_v22 }
 0x572   : > { %v1539_v7 = vsel %vm1017_vm11, %v1538_v60, %v1534_v2  ;;  %v3681_v2 = vld [vmem:[#allocation25_spill] sm:$0xff]  ;;  %v3682_v60 = vld [vmem:[#allocation24_spill] sm:$0xff] }
 0x573   : > { %v1540_v56 = vpack.c.b16 %v1539_v7, %v1539_v7  ;;  %v1590_v48 = vpop.permute.xlu0 %1589  ;;  %v2253_v7 = vcombine.low %v3682_v60, %v3681_v2 }
 0x574   : > { %v1597_v55 = vrot.slane %v1590_v48, %v3239_v50  ;;  %v3684_v48 = vld [vmem:[#allocation38_spill] sm:$0xff] }
 0x575   : > { %2391 = vmatmul.mubr.msk.bf16.vlgmr.msra.gmra.mxu0 %vm1090_vm12, %v1540_v56  ;;  %v3683_v56 = vld [vmem:[#allocation37_spill] sm:$0xff] }
 0x576   : > { %2401 = vmatpush3.bf16.msra.mxu0 %v3038_v53  ;;  %2402 = vmatprep.mubr.msk.bf16.mxu0 %vm2759_vm9, %v3679_v61 }
 0x577   : > { %v1593_v37 = vpop.permute.xlu0 %1592  ;;  %2412 = vmatprep.subr.bf16.mxu0 %v3679_v61  ;;  %2132 = vrot.lane.b32.xlu0 %v3683_v56, %s2762_s25 }
 0x578   : > { %v1601_v49 = vrot.slane %v1593_v37, %v3242_v1 }
 0x57a   : > { %v1602_v35 = vsel %vm1017_vm11, %v1601_v49, %v1597_v55 }
 0x57b   : > { %v1603_v29 = vpack.c.b16 %v1602_v35, %v1602_v35  ;;  %v1653_v51 = vpop.permute.xlu0 %1652 }
 0x57c   : > { %v1660_v5 = vrot.slane %v1653_v51, %v3239_v50 }
 0x57d   : > { %2397 = vmatmul.mubr.msk.bf16.vlgmr.msra.gmra.mxu1 %vm1090_vm12, %v1603_v29 }
 0x57e   : > { %v1665_v45 = vsel %vm1017_vm11, %v1664_v4, %v1660_v5  ;;  %2407 = vmatpush3.bf16.msra.mxu1 %v3043_v54  ;;  %2408 = vmatprep.mubr.msk.bf16.mxu1 %vm2759_vm9, %v3679_v61 }
 0x57f   : > { %v1666_v32 = vpack.c.b16 %v1665_v45, %v1665_v45  ;;  %v1716_v62 = vpop.permute.xlu0 %1715  ;;  %2418 = vmatprep.subr.bf16.mxu1 %v3679_v61 }
 0x580   : > { %v1723_v26 = vrot.slane %v1716_v62, %v3239_v50 }
 0x581   : > { %2403 = vmatmul.mubr.msk.bf16.vlgmr.msra.gmra.mxu0 %vm1090_vm12, %v1666_v32 }
 0x582   : > { %2413 = vmatpush3.bf16.msra.mxu0 %v3050_v58  ;;  %2414 = vmatprep.mubr.msk.bf16.mxu0 %vm2759_vm9, %v3679_v61 }
 0x583   : > { %v1719_v46 = vpop.permute.xlu0 %1718  ;;  %2424 = vmatprep.subr.bf16.mxu0 %v3679_v61 }
 0x584   : > { %v1727_v27 = vrot.slane %v1719_v46, %v3242_v1 }
 0x586   : > { %v1728_v14 = vsel %vm1017_vm11, %v1727_v27, %v1723_v26 }
 0x587   : > { %v1729_v28 = vpack.c.b16 %v1728_v14, %v1728_v14  ;;  %v1779_v34 = vpop.permute.xlu0 %1778 }
 0x588   : > { %v1786_v36 = vrot.slane %v1779_v34, %v3239_v50  ;;  %v2259_v50 = vcombine.low %v2919_v11, %v2921_v12 }
 0x589   : > { %2409 = vmatmul.mubr.msk.bf16.vlgmr.msra.gmra.mxu1 %vm1090_vm12, %v1729_v28 }
 0x58a   : > { %2419 = vmatpush3.bf16.msra.mxu1 %v3058_v63  ;;  %2420 = vmatprep.mubr.msk.bf16.mxu1 %vm2759_vm9, %v3679_v61 }
 0x58b   : > { %v1782_v3 = vpop.permute.xlu0 %1781  ;;  %2436 = vmatprep.subr.bf16.mxu1 %v3679_v61 }
 0x58c   : > { %v1790_v30 = vrot.slane %v1782_v3, %v3242_v1 }
 0x58e   : > { %v1791_v47 = vsel %vm1017_vm11, %v1790_v30, %v1786_v36 }
 0x58f   : > { %v1792_v52 = vpack.c.b16 %v1791_v47, %v1791_v47  ;;  %v1845_v39 = vpop.permute.xlu0 %1844 }
 0x590   : > { %v1853_v8 = vrot.slane %v1845_v39, %v3242_v1  ;;  %v2256_v1 = vcombine.low %v2956_v19, %v2961_v20 }
 0x591   : > { %2415 = vmatmul.mubr.msk.bf16.vlgmr.msra.gmra.mxu0 %vm1090_vm12, %v1792_v52 }
 0x592   : > { %v1854_v0 = vsel %vm1017_vm11, %v1853_v8, %v1849_v38  ;;  %2432 = vmatprep.mubr.msk.bf16.mxu0 %vm2759_vm9, %v3679_v61  ;;  %2425 = vmatpush3.bf16.msra.mxu0 %v2256_v1 }
 0x593   : > { %v1855_v44 = vpack.c.b16 %v1854_v0, %v1854_v0  ;;  %2426 = vmatprep.subr.bf16.mxu0 %v3679_v61 }
 0x595   : > { %2421 = vmatmul.mubr.msk.bf16.vlgmr.msra.gmra.mxu1 %vm1090_vm12, %v1855_v44 }
 0x596   : > { %2440 = vmatprep.mubr.msk.bf16.mxu1 %vm2759_vm9, %v3679_v61  ;;  %2437 = vmatpush3.bf16.msra.mxu1 %v2259_v50 }
 0x597   : > { %2438 = vmatprep.subr.bf16.mxu1 %v3679_v61  ;;  %2427 = vmatpush3.bf16.msra.mxu0 %v2255_v42 }
 0x598   : > { %2428 = vmatprep.subr.bf16.mxu0 %v3679_v61 }
 0x59a   : > { %2439 = vmatpush3.bf16.msra.mxu1 %v2258_v6 }
 0x59b   : > { %2444 = vmatprep.subr.bf16.mxu1 %v3679_v61  ;;  %2429 = vmatpush3.bf16.msra.mxu0 %v2254_v57 }
 0x59c   : > { %2430 = vmatprep.subr.bf16.mxu0 %v3679_v61 }
 0x59d   : > { %2441 = vmatmul.mubr.msk.bf16.vlgmr.msra.gmra.mxu1 %vm713_vm10, %v1902_v40 }
 0x59e   : > { %2445 = vmatpush3.bf16.msra.mxu1 %v2262_v25  ;;  %2448 = vmatprep.mubr.msk.bf16.mxu1 %vm2759_vm9, %v3679_v61 }
 0x59f   : > { %2446 = vmatprep.subr.bf16.mxu1 %v3679_v61  ;;  %2431 = vmatpush3.bf16.msra.mxu0 %v2253_v7 }
 0x5a2   : > { %2447 = vmatpush3.bf16.msra.mxu1 %v2261_v13 }
 0x5a5   : > { %2449 = vmatmul.mubr.msk.bf16.vlgmr.msra.gmra.mxu1 %vm713_vm10, %v3684_v48 }
 0x625   : > { %v1453_v37 = vpop.f32.mrf.mxu1 }
 0x626   : > { %v1903_v1 = vpack.c.bf16 %v1453_v37, %v1453_v37 }
 0x627   : > { %v2380_v55 = vpop.f32.mrf.mxu1 }
 0x628   : > { %v1919_v7 = vunpack.c.l.b16 %v1903_v1 }
 0x629   : > { %v1456_v49 = vpop.f32.mrf.mxu1 }
 0x62b   : > { %v2381_v31 = vpop.f32.mrf.mxu1 }
 0x62d   : > { %v1516_v35 = vpop.f32.mrf.mxu1 }
 0x62e   : > { %v1904_v30 = vpack.c.bf16 %v1516_v35, %v1516_v35 }
 0x62f   : > { %v2386_v29 = vpop.f32.mrf.mxu1 }
 0x630   : > { %v1920_v8 = vunpack.c.l.b16 %v1904_v30 }
 0x631   : > { %v1519_v51 = vpop.f32.mrf.mxu1 }
 0x632   : > { %v1927_v40 = vrot.slane %v1920_v8, 7 }
 0x633   : > { %v2387_v4 = vpop.f32.mrf.mxu1 }
 0x634   : > { %v1928_v35 = vsel %vm275_vm2, %v1927_v40, %v1919_v7 }
 0x635   : > { %v1579_v5 = vpop.f32.mrf.mxu0 }
 0x636   : > { %v1905_v41 = vpack.c.bf16 %v1579_v5, %v1579_v5 }
 0x637   : > { %v2392_v45 = vpop.f32.mrf.mxu0 }
 0x638   : > { %v1921_v44 = vunpack.c.l.b16 %v1905_v41 }
 0x639   : > { %v1582_v61 = vpop.f32.mrf.mxu0 }
 0x63a   : > { %v1929_v2 = vrot.slane %v1921_v44, 6 }
 0x63b   : > { %v2393_v32 = vpop.f32.mrf.mxu0 }
 0x63c   : > { %v1930_v37 = vsel %vm277_vm3, %v1929_v2, %v1928_v35 }
 0x63d   : > { %v1642_v62 = vpop.f32.mrf.mxu1 }
 0x63e   : > { %v1906_v52 = vpack.c.bf16 %v1642_v62, %v1642_v62 }
 0x63f   : > { %v2398_v46 = vpop.f32.mrf.mxu1 }
 0x640   : > { %v1922_v6 = vunpack.c.l.b16 %v1906_v52 }
 0x641   : > { %v1645_v26 = vpop.f32.mrf.mxu1  ;;  %v1705_v27 = vpop.f32.mrf.mxu0 }
 0x642   : > { %v1907_v39 = vpack.c.bf16 %v1705_v27, %v1705_v27  ;;  %v1931_v56 = vrot.slane %v1922_v6, 5 }
 0x643   : > { %v2399_v14 = vpop.f32.mrf.mxu1  ;;  %v2404_v28 = vpop.f32.mrf.mxu0 }
 0x644   : > { %v1923_v42 = vunpack.c.l.b16 %v1907_v39  ;;  %v1932_v61 = vsel %vm279_vm4, %v1931_v56, %v1930_v37 }
 0x645   : > { %v1708_v34 = vpop.f32.mrf.mxu0 }
 0x646   : > { %v1933_v55 = vrot.slane %v1923_v42, 4 }
 0x647   : > { %v2405_v3 = vpop.f32.mrf.mxu0 }
 0x648   : > { %v1934_v62 = vsel %vm281_vm5, %v1933_v55, %v1932_v61 }
 0x649   : > { %v1768_v36 = vpop.f32.mrf.mxu1 }
 0x64a   : > { %v1908_v0 = vpack.c.bf16 %v1768_v36, %v1768_v36 }
 0x64b   : > { %v2410_v47 = vpop.f32.mrf.mxu1 }
 0x64c   : > { %v1924_v57 = vunpack.c.l.b16 %v1908_v0 }
 0x64d   : > { %v1771_v38 = vpop.f32.mrf.mxu1 }
 0x64e   : > { %v1935_v29 = vrot.slane %v1924_v57, 3 }
 0x64f   : > { %v2411_v50 = vpop.f32.mrf.mxu1 }
 0x650   : > { %v1936_v26 = vsel %vm283_vm6, %v1935_v29, %v1934_v62  ;;  %v3685_v50 = vld [vmem:[#allocation26_spill] sm:$0xff] }
 0x651   : > { %v1831_v25 = vpop.f32.mrf.mxu0  ;;  %v2121_v1 = vrot.slane %v3685_v50, %v3178_v59  ;;  %v2133_v59 = vpop.permute.xlu0 %2132 }
 0x652   : > { %v1909_v13 = vpack.c.bf16 %v1831_v25, %v1831_v25 }
 0x653   : > { %v2416_v60 = vpop.f32.mrf.mxu0 }
 0x654   : > { %v1925_v48 = vunpack.c.l.b16 %v1909_v13 }
 0x655   : > { %v1834_v49 = vpop.f32.mrf.mxu0  ;;  %v1894_v31 = vpop.f32.mrf.mxu1 }
 0x656   : > { %v1910_v51 = vpack.c.bf16 %v1894_v31, %v1894_v31  ;;  %v1937_v4 = vrot.slane %v1925_v48, 2 }
 0x657   : > { %v2417_v5 = vpop.f32.mrf.mxu0  ;;  %v2422_v45 = vpop.f32.mrf.mxu1 }
 0x658   : > { %v1926_v32 = vunpack.c.l.b16 %v1910_v51  ;;  %v1938_v14 = vsel %vm285_vm7, %v1937_v4, %v1936_v26 }
 0x659   : > { %v1897_v46 = vpop.f32.mrf.mxu1 }
 0x65a   : > { %v1939_v27 = vrot.slane %v1926_v32, 1 }
 0x65b   : > { %v2423_v28 = vpop.f32.mrf.mxu1 }
 0x65c   : > { %v1940_v34 = vsel %vm287_vm8, %v1939_v27, %v1938_v14 }
 0x65d   : > { %v1941_v3 = vpack.c.b16 %v1940_v34, %v1940_v34  ;;  %v2058_v36 = vpop.f32.mrf.mxu1 }
 0x65f   : > { %2433 = vmatmul.mubr.msk.bf16.vlgmr.msra.gmra.mxu0 %vm154_vm1, %v1941_v3  ;;  %v2442_v30 = vpop.f32.mrf.mxu1 }
 0x661   : > { %v2061_v41 = vpop.f32.mrf.mxu1 }
 0x663   : > { %v2443_v47 = vpop.f32.mrf.mxu1 }
 0x665   : > { %v2110_v52 = vpop.f32.mrf.mxu1 }
 0x667   : > { %v2450_v39 = vpop.f32.mrf.mxu1 }
 0x669   : > { %v2113_v38 = vpop.f32.mrf.mxu1 }
 0x66b   : > { %v2451_v8 = vpop.f32.mrf.mxu1 }
 0x71f   : > { %v2003_v0 = vpop.f32.mrf.mxu0 }
 0x720   : > { %v2059_v44 = vadd.f32 %v2058_v36, %v2003_v0 }
 0x721   : > { %v2434_v6 = vpop.f32.mrf.mxu0 }
 0x722   : > { %v2116_v42 = vadd.f32 %v2110_v52, %v2059_v44 }
 0x723   : > { %v2006_v25 = vpop.f32.mrf.mxu0 }
 0x724   : > { %v2123_v40 = vadd.f32 %v2121_v1, %v2116_v42 }
 0x725   : > { %v2435_v57 = vpop.f32.mrf.mxu0 }
 0x726   : > { %2589 = vtanh.f32 %v2123_v40  ;;  %v2264_v2 = vmul.f32 -1.442695, %v2123_v40 }
 0x728   : > { %2591 = vpow2.f32 %v2264_v2 }
 0x733   : > { %v2590_v13 = vpop.eup %2589 }
 0x734   : > { %2137 = vrot.lane.b32.xlu1 %v2590_v13, %s2763_s5 }
 0x735   : > { %v2592_v60 = vpop.eup %2591 }
 0x736   : > { %v2127_v7 = vadd.f32 1.0, %v2592_v60 }
 0x738   : > { %2593 = vrcp.f32 %v2127_v7 }
 0x745   : > { %v2594_v56 = vpop.eup %2593 }
 0x746   : > { %v2135_v49 = vmul.f32 %v2594_v56, %v2133_v59 }
 0x7a6   : > { %v2138_v48 = vpop.permute.xlu1 %2137 }
 0x7a7   : > { %v2140_v55 = vmul.f32 %v2594_v56, %v2138_v48 }
 0x7a9   : > { %2142 = vrot.lane.b32.xlu1 %v2140_v55, %s2762_s25 }
 0x81b   : > { %v2143_v31 = vpop.permute.xlu1 %2142 }
 0x81c   : > { %v2145_v35 = vadd.f32 %v2143_v31, %v2135_v49 }
 0x81e   : > { %2595 = vtanh.f32 %v2145_v35 }
 0x82b   : > { %v2596_v29 = vpop.eup %2595 }
 0x82c   : > { %2148 = vrot.lane.b32.xlu0 %v2596_v29, %s2763_s5 }
 0x89e   : > { %v2149_v51 = vpop.permute.xlu0 %2148 }
 0x89f   : > { %v2151_v37 = vmul.f32 %v2594_v56, %v2149_v51 }
 0x8a1   : > { %v2267_v4 = vpack.c.bf16 %v2151_v37, %v2151_v37  ;;  %2164 = vrot.lane.b32.xlu0 %v2151_v37, %s2762_s25 }
 0x8a3   : > { %2156 = vrot.lane.b32.xlu1 %v2267_v4, %s2762_s25 }
 0x8a7   : > { %2168 = vrot.lane.b32.xlu1 %v2145_v35, %s2764_s26 }
 0x913   : > { %v2165_v47 = vpop.permute.xlu0 %2164  }
 0x915   : > { %v2157_v5 = vpop.permute.xlu1 %2156  ;;  %690 = sbr.rel (!%p688_p11) target bundleno = 338 (0x152), region = 117 }
 0x916   : > { %2162 = vst.msk [vmem:[%s2160_s27] sm:$0xf] %vm2161_vm13, %v2157_v5 }
 0x919   : > { %v2169_v26 = vpop.permute.xlu1 %2168  }
 0x91a   :  { %2708 = shalt.err (!%p2705_p2)
}
 0x91b   :  { %2182 = dma.vmem_to_hbm [thread:$0]  %s2177_s6, 512, %s3605_s17, [#allocation5], %s2751_s1, %s2751_s1, %s2752_s20  }
 0x91c   :  { %2735 = dma.done.wait [#allocation5], 512  }
 0x91d   :  { %2736 = vsyncadd [#allocation5], 4294966784 }
 0x91e   :  { %2186 = vsyncpa [#allocation4], 1 }
 0x91f   :  { %2187 = vsyncpa [#allocation7], 1 }
 0x920   :  { %2188 = vsyncpa [#allocation10], 1 }
 0x921   :  { %2189 = vsyncpa [#allocation5], 1 }

</bundles_post_ra>
